<compile_context>
chip_gen: v7x
topology: tpu7x:2x2x1
jax: 0.10.0
libtpu: 0.0.40
codegen_flags: <defaults>
</compile_context>

<pallas_src>
import math
from functools import partial

import jax
import jax.numpy as jnp
from jax import lax
from jax.experimental import pallas as pl
from jax.experimental.pallas import tpu as pltpu


# ----------------------------------------------------------------------------
# Helpers
# ----------------------------------------------------------------------------
def _vmem_limit_bytes() -> int:
    # ~75% of physical VMEM, capped at 100 MiB:
    #   v5e/v6e (128 MiB) -> ~96 MiB, v7x (64 MiB) -> ~48 MiB.
    try:
        cap = pltpu.get_tpu_info().vmem_capacity_bytes
    except Exception:
        cap = 128 * 1024 * 1024
    return int(min(cap * 3 // 4, 100 * 1024 * 1024))


def _pick_batch_tile(n: int, s: int, target_rows: int = 256, max_tile: int = 16) -> int:
    # Batch several sequences per grid step so matmul M ~= target_rows,
    # shrunk to a divisor of n (avoids padded partial blocks).
    bt = max(1, min(n, max_tile, max(1, target_rows // max(s, 1))))
    while n % bt:
        bt -= 1
    return max(bt, 1)


# ----------------------------------------------------------------------------
# Pallas kernel: one full TransformerBlock for one batch tile.
# ----------------------------------------------------------------------------
def transformer_block_kernel(
    x_ref,      # (BT*S, E)     activations, flattened over (batch_tile, seq)
    xh_ref,     # (BT, H, S, D) head-major activations (wrapper-prepared layout)
    mask_ref,   # (BT, S, S)    int8 mask (1 = keep, 0 = masked)
    wq_ref, wk_ref, wv_ref,     # (D, D) per-head projections (pre-transposed)
    wo_ref,     # (E, E)        fc_out weight (pre-transposed)
    bo_ref,     # (1, E)  f32
    g1_ref, be1_ref,            # (1, E) LayerNorm1 gamma/beta (f32)
    w1_ref,     # (E, FE)
    b1_ref,     # (1, FE) f32
    w2_ref,     # (FE, E)
    b2_ref,     # (1, E)  f32
    g2_ref, be2_ref,            # (1, E) LayerNorm2 gamma/beta (f32)
    out_ref,    # (BT*S, E)
    proj_ref,   # VMEM scratch (BT*S, E) f32: attention output pre-projected by Wo
    *,
    batch_tile: int,
    seq_len: int,
    heads: int,
    head_dim: int,
    embed_size: int,
    mm_dtype,
    approx_recip: bool,
):
    B, S, H, D = batch_tile, seq_len, heads, head_dim
    f32 = jnp.float32
    inv_sqrt_e = f32(1.0 / math.sqrt(embed_size))
    # PyTorch: masked_fill(-1e20) THEN / sqrt(E); scale is folded into Q, so the
    # additive bias is pre-scaled once (still absorbs any finite score).
    neg_bias = f32(-1e20 / math.sqrt(embed_size))

    # fc_out-projected attention accumulator (scratch persists across grid steps
    # -> must be re-initialized every step).
    proj_ref[...] = jnp.zeros_like(proj_ref)

    wq = wq_ref[...]
    wk = wk_ref[...]
    wv = wv_ref[...]

    for b in range(B):                       # static loop, B small
        rows = pl.ds(b * S, S)
        # additive mask bias built ONCE per batch element (not per head)
        bias = (1.0 - mask_ref[b].astype(f32)) * neg_bias              # (S, S)
        for h in range(H):                   # static loop, H small
            xh = xh_ref[b, h]                # (S, D) lane-dense leading-axis read
            qh = jnp.dot(xh, wq, preferred_element_type=f32) * inv_sqrt_e
            kh = jnp.dot(xh, wk, preferred_element_type=f32)
            vh = jnp.dot(xh, wv, preferred_element_type=f32)

            # scores = (q / sqrt(E)) @ k^T + bias
            scores = lax.dot_general(
                qh.astype(mm_dtype), kh.astype(mm_dtype),
                (((1,), (1,)), ((), ())),
                preferred_element_type=f32,
            ) + bias                                                    # (S, S)

            smax = jnp.max(scores, axis=-1, keepdims=True)
            p = jnp.exp(scores - smax)
            denom = jnp.sum(p, axis=-1, keepdims=True)
            p = p * pl.reciprocal(denom, approx=approx_recip)

            oh = jnp.dot(p.astype(mm_dtype), vh.astype(mm_dtype),
                         preferred_element_type=f32)                    # (S, D)

            # fold fc_out per head: o_h @ Wo_t[h*D:(h+1)*D, :] accumulated into
            # the (BT*S, E) scratch -> no lane-sliced activation stores, no concat.
            wo_h = wo_ref[pl.ds(h * D, D), :]                           # (D, E)
            proj_ref[rows, :] += jnp.dot(oh.astype(mm_dtype), wo_h,
                                         preferred_element_type=f32)

    def layernorm(z, g, bta):
        mu = jnp.mean(z, axis=-1, keepdims=True)
        var = jnp.mean((z - mu) ** 2, axis=-1, keepdims=True)
        return (z - mu) * lax.rsqrt(var + 1e-5) * g + bta

    # post-attention on the flattened (BT*S, E) slab: big-M matmuls, f32 math
    x32 = x_ref[...].astype(f32)
    attn = proj_ref[...] + bo_ref[...]
    h1 = layernorm(attn + x32, g1_ref[...], be1_ref[...])

    ff = jnp.dot(h1.astype(mm_dtype), w1_ref[...],
                 preferred_element_type=f32) + b1_ref[...]
    ff = jnp.maximum(ff, 0.0)
    ff = jnp.dot(ff.astype(mm_dtype), w2_ref[...],
                 preferred_element_type=f32) + b2_ref[...]

    out = layernorm(ff + h1, g2_ref[...], be2_ref[...])
    out_ref[...] = out.astype(out_ref.dtype)


# ----------------------------------------------------------------------------
# Wrapper: one TransformerBlock call over the whole batch.
# ----------------------------------------------------------------------------
def transformer_block(x, mask_i8, lp, *, heads, head_dim, mm_dtype):
    N, S, E = x.shape
    H, D = heads, head_dim
    bt = _pick_batch_tile(N, S)
    grid = (N // bt,)

    # wrapper-side layout plumbing (plain XLA): flattened view for residual/FFN,
    # head-major view so the kernel never slices lanes at head_dim granularity.
    x_flat = x.reshape(N * S, E)
    x_heads = jnp.transpose(x.reshape(N, S, H, D), (0, 2, 1, 3))   # (N, H, S, D)

    def cast_w(w):
        return w.astype(mm_dtype)

    weight_args = (
        cast_w(lp["wq_t"]), cast_w(lp["wk_t"]), cast_w(lp["wv_t"]),
        cast_w(lp["wo_t"]), lp["bo"],
        lp["g1"], lp["be1"],
        cast_w(lp["w1_t"]), lp["b1"], cast_w(lp["w2_t"]), lp["b2"],
        lp["g2"], lp["be2"],
    )

    in_specs = [
        pl.BlockSpec((bt * S, E), lambda i: (i, 0)),          # x (flattened)
        pl.BlockSpec((bt, H, S, D), lambda i: (i, 0, 0, 0)),  # x (head-major)
        pl.BlockSpec((bt, S, S), lambda i: (i, 0, 0)),        # int8 mask
    ]
    for w in weight_args:
        # constant index_map: weights stay resident across the batch grid
        in_specs.append(pl.BlockSpec(w.shape, lambda i, _nd=w.ndim: (0,) * _nd))

    kernel = partial(
        transformer_block_kernel,
        batch_tile=bt,
        seq_len=S,
        heads=H,
        head_dim=D,
        embed_size=E,
        mm_dtype=mm_dtype,
        approx_recip=(mm_dtype != jnp.float32),
    )

    out_flat = pl.pallas_call(
        kernel,
        out_shape=jax.ShapeDtypeStruct((N * S, E), x.dtype),
        grid=grid,
        in_specs=in_specs,
        out_specs=pl.BlockSpec((bt * S, E), lambda i: (i, 0)),
        scratch_shapes=[pltpu.VMEM((bt * S, E), jnp.float32)],
        compiler_params=pltpu.CompilerParams(
            dimension_semantics=("parallel",),
            vmem_limit_bytes=_vmem_limit_bytes(),
        ),
    )(x_flat, x_heads, mask_i8, *weight_args)

    return out_flat.reshape(N, S, E)


# ----------------------------------------------------------------------------
# Encoder forward (embedding gather is plain-JAX glue).
#   mm_dtype=jnp.float32  -> exact f32 path (matches PyTorch numerics)
#   mm_dtype=jnp.bfloat16 -> bf16 matmul operands / activations, f32 accumulation
# ----------------------------------------------------------------------------
def encoder_forward(tokens, mask, params, *, heads, head_dim, mm_dtype=jnp.float32):
    N, S = tokens.shape
    positions = jnp.arange(S)
    x = params["word_emb"][tokens] + params["pos_emb"][positions][None, :, :]
    x = x.astype(mm_dtype)
    # compact int8 mask (1 = keep, 0 = masked); bias expansion happens in-kernel.
    mask_i8 = (mask != 0).astype(jnp.int8)
    for lp in params["layers"]:
        x = transformer_block(x, mask_i8, lp,
                              heads=heads, head_dim=head_dim, mm_dtype=mm_dtype)
    return x


# ----------------------------------------------------------------------------
# Deterministic parameter initialization (mirrors the PyTorch module shapes).
# ----------------------------------------------------------------------------
def init_params(key, *, vocab, max_len, embed_size, heads, num_layers, fwd_exp):
    head_dim = embed_size // heads
    fe = fwd_exp * embed_size

    def nrm(k, shape, scale=0.05):
        return scale * jax.random.normal(k, shape, dtype=jnp.float32)

    keys = jax.random.split(key, 2 + num_layers)
    params = {
        "word_emb": nrm(keys[0], (vocab, embed_size), 0.5),
        "pos_emb": nrm(keys[1], (max_len, embed_size), 0.5),
        "layers": [],
    }

    for li in range(num_layers):
        ks = jax.random.split(keys[2 + li], 10)
        # PyTorch Linear stores W as (out, in); forward is x @ W.T.
        wq = nrm(ks[0], (head_dim, head_dim))
        wk = nrm(ks[1], (head_dim, head_dim))
        wv = nrm(ks[2], (head_dim, head_dim))
        wo = nrm(ks[3], (embed_size, embed_size))
        bo = nrm(ks[4], (embed_size,))
        w1 = nrm(ks[5], (fe, embed_size))
        b1 = nrm(ks[6], (fe,))
        w2 = nrm(ks[7], (embed_size, fe))
        b2 = nrm(ks[8], (embed_size,))

        lp = {
            # raw weights (used by the pure-JAX reference)
            "wq": wq, "wk": wk, "wv": wv,
            "wo_raw": wo, "w1_raw": w1, "w2_raw": w2,
            # kernel-ready (pre-transposed, 2-D biases) -- no kron block-diagonal
            "wq_t": wq.T, "wk_t": wk.T, "wv_t": wv.T,
            "wo_t": wo.T,
            "bo": bo.reshape(1, -1),
            "g1": jnp.ones((1, embed_size), jnp.float32),
            "be1": jnp.zeros((1, embed_size), jnp.float32),
            "w1_t": w1.T,
            "b1": b1.reshape(1, -1),
            "w2_t": w2.T,
            "b2": b2.reshape(1, -1),
            "g2": jnp.ones((1, embed_size), jnp.float32),
            "be2": jnp.zeros((1, embed_size), jnp.float32),
        }
        params["layers"].append(lp)
    return params


# ----------------------------------------------------------------------------
# Pure-JAX reference mirroring the PyTorch forward exactly (for verification).
# ----------------------------------------------------------------------------
def encoder_reference(tokens, mask, params, *, heads, head_dim, embed_size):
    def layernorm(z, g, b):
        mu = jnp.mean(z, axis=-1, keepdims=True)
        var = jnp.mean((z - mu) ** 2, axis=-1, keepdims=True)
        return (z - mu) * lax.rsqrt(var + 1e-5) * g + b

    N, S = tokens.shape
    positions = jnp.arange(S)
    x = params["word_emb"][tokens] + params["pos_emb"][positions][None, :, :]

    for lp in params["layers"]:
        q_in = x
        xr = x.reshape(N, S, heads, head_dim)
        v = jnp.einsum("nlhd,ed->nlhe", xr, lp["wv"])
        k = jnp.einsum("nlhd,ed->nlhe", xr, lp["wk"])
        q = jnp.einsum("nlhd,ed->nlhe", xr, lp["wq"])
        ene = jnp.einsum("nqhd,nkhd->nhqk", q, k)
        ene = jnp.where(mask[:, None, :, :] == 0, -1e20, ene)
        att = jax.nn.softmax(ene / math.sqrt(embed_size), axis=3)
        out = jnp.einsum("nhql,nlhd->nqhd", att, v).reshape(N, S, embed_size)
        out = out @ lp["wo_raw"].T + lp["bo"][0]
        h1 = layernorm(out + q_in, lp["g1"][0], lp["be1"][0])
        ff = jax.nn.relu(h1 @ lp["w1_raw"].T + lp["b1"][0]) @ lp["w2_raw"].T + lp["b2"][0]
        x = layernorm(ff + h1, lp["g2"][0], lp["be2"][0])
    return x


# ----------------------------------------------------------------------------
if __name__ == "__main__":
    # small shapes consistent with the module
    N, S = 2, 8
    EMBED, HEADS, NUM_LAYERS, FWD_EXP = 32, 4, 2, 4
    VOCAB, MAX_LEN = 50, 16
    HEAD_DIM = EMBED // HEADS

    root = jax.random.PRNGKey(0)
    k_params, k_tok = jax.random.split(root)

    params = init_params(
        k_params,
        vocab=VOCAB, max_len=MAX_LEN, embed_size=EMBED,
        heads=HEADS, num_layers=NUM_LAYERS, fwd_exp=FWD_EXP,
    )

    tokens = jax.random.randint(k_tok, (N, S), 0, VOCAB, dtype=jnp.int32)
    # causal mask (1 = keep, 0 = masked), same for every head
    mask = jnp.broadcast_to(
        jnp.tril(jnp.ones((S, S), jnp.float32)), (N, S, S)
    )

    # exact f32 path (strict check against the PyTorch-mirroring reference)
    out = encoder_forward(tokens, mask, params,
                          heads=HEADS, head_dim=HEAD_DIM, mm_dtype=jnp.float32)
    out = jax.block_until_ready(out)

    ref = encoder_reference(
        tokens, mask, params,
        heads=HEADS, head_dim=HEAD_DIM, embed_size=EMBED,
    )
    assert out.shape == (N, S, EMBED)
    assert jnp.allclose(out, ref, atol=1e-4, rtol=1e-4), (
        f"max abs diff {jnp.max(jnp.abs(out - ref))}"
    )

    # bf16 matmul-input path (performance mode): compile/run + sanity check
    out_bf16 = encoder_forward(tokens, mask, params,
                               heads=HEADS, head_dim=HEAD_DIM,
                               mm_dtype=jnp.bfloat16)
    out_bf16 = jax.block_until_ready(out_bf16)
    assert out_bf16.shape == (N, S, EMBED)
    assert out_bf16.dtype == jnp.bfloat16
    assert bool(jnp.all(jnp.isfinite(out_bf16.astype(jnp.float32))))

    print("KERNEL_OK")
</pallas_src>

<mosaic_0001>
module attributes {stable_mosaic.version = 11 : i64} {
  func.func @transformer_block_kernel(%arg0: i32, %arg1: memref<16x32xf32, #tpu.memory_space<vmem>>, %arg2: memref<2x4x8x8xf32, #tpu.memory_space<vmem>>, %arg3: memref<2x8x8xi8, #tpu.memory_space<vmem>>, %arg4: memref<8x8xf32, #tpu.memory_space<vmem>>, %arg5: memref<8x8xf32, #tpu.memory_space<vmem>>, %arg6: memref<8x8xf32, #tpu.memory_space<vmem>>, %arg7: memref<32x32xf32, #tpu.memory_space<vmem>>, %arg8: memref<1x32xf32, #tpu.memory_space<vmem>>, %arg9: memref<1x32xf32, #tpu.memory_space<vmem>>, %arg10: memref<1x32xf32, #tpu.memory_space<vmem>>, %arg11: memref<32x128xf32, #tpu.memory_space<vmem>>, %arg12: memref<1x128xf32, #tpu.memory_space<vmem>>, %arg13: memref<128x32xf32, #tpu.memory_space<vmem>>, %arg14: memref<1x32xf32, #tpu.memory_space<vmem>>, %arg15: memref<1x32xf32, #tpu.memory_space<vmem>>, %arg16: memref<1x32xf32, #tpu.memory_space<vmem>>, %arg17: memref<16x32xf32, #tpu.memory_space<vmem>>, %arg18: memref<16x32xf32, #tpu.memory_space<vmem>>) attributes {dimension_semantics = [#tpu.dimension_semantics<parallel>], iteration_bounds = array<i64: 1>, scalar_prefetch = 0 : i64, scratch_operands = 1 : i64, tpu.core_type = #tpu.core_type<tc>, window_params = [{transform_indices = @transform_0, window_bounds = array<i64: 16, 32>}, {transform_indices = @transform_1, window_bounds = array<i64: 2, 4, 8, 8>}, {transform_indices = @transform_2, window_bounds = array<i64: 2, 8, 8>}, {pipeline_mode = #tpu.pipeline_mode<synchronous>, transform_indices = @transform_3, window_bounds = array<i64: 8, 8>}, {pipeline_mode = #tpu.pipeline_mode<synchronous>, transform_indices = @transform_4, window_bounds = array<i64: 8, 8>}, {pipeline_mode = #tpu.pipeline_mode<synchronous>, transform_indices = @transform_5, window_bounds = array<i64: 8, 8>}, {pipeline_mode = #tpu.pipeline_mode<synchronous>, transform_indices = @transform_6, window_bounds = array<i64: 32, 32>}, {pipeline_mode = #tpu.pipeline_mode<synchronous>, transform_indices = @transform_7, window_bounds = array<i64: 1, 32>}, {pipeline_mode = #tpu.pipeline_mode<synchronous>, transform_indices = @transform_8, window_bounds = array<i64: 1, 32>}, {pipeline_mode = #tpu.pipeline_mode<synchronous>, transform_indices = @transform_9, window_bounds = array<i64: 1, 32>}, {pipeline_mode = #tpu.pipeline_mode<synchronous>, transform_indices = @transform_10, window_bounds = array<i64: 32, 128>}, {pipeline_mode = #tpu.pipeline_mode<synchronous>, transform_indices = @transform_11, window_bounds = array<i64: 1, 128>}, {pipeline_mode = #tpu.pipeline_mode<synchronous>, transform_indices = @transform_12, window_bounds = array<i64: 128, 32>}, {pipeline_mode = #tpu.pipeline_mode<synchronous>, transform_indices = @transform_13, window_bounds = array<i64: 1, 32>}, {pipeline_mode = #tpu.pipeline_mode<synchronous>, transform_indices = @transform_14, window_bounds = array<i64: 1, 32>}, {pipeline_mode = #tpu.pipeline_mode<synchronous>, transform_indices = @transform_15, window_bounds = array<i64: 1, 32>}, {transform_indices = @transform_16, window_bounds = array<i64: 16, 32>}]} {
    %cst = arith.constant 0.000000e+00 : f32
    %0 = vector.broadcast %cst : f32 to vector<16x32xf32>
    %c0 = arith.constant 0 : index
    %c0_0 = arith.constant 0 : index
    %1 = vector.load %arg18[%c0, %c0_0] : memref<16x32xf32, #tpu.memory_space<vmem>>, vector<16x32xf32>
    tpu.vector_store %arg18[%c0, %c0_0], %0 {strides = array<i32>} : memref<16x32xf32, #tpu.memory_space<vmem>>, vector<16x32xf32>,
    %c0_1 = arith.constant 0 : index
    %c0_2 = arith.constant 0 : index
    %2 = vector.load %arg4[%c0_1, %c0_2] : memref<8x8xf32, #tpu.memory_space<vmem>>, vector<8x8xf32>
    %c0_3 = arith.constant 0 : index
    %c0_4 = arith.constant 0 : index
    %3 = vector.load %arg5[%c0_3, %c0_4] : memref<8x8xf32, #tpu.memory_space<vmem>>, vector<8x8xf32>
    %c0_5 = arith.constant 0 : index
    %c0_6 = arith.constant 0 : index
    %4 = vector.load %arg6[%c0_5, %c0_6] : memref<8x8xf32, #tpu.memory_space<vmem>>, vector<8x8xf32>
    %c0_7 = arith.constant 0 : index
    %c0_8 = arith.constant 0 : index
    %c0_9 = arith.constant 0 : index
    %5 = vector.load %arg3[%c0_7, %c0_8, %c0_9] : memref<2x8x8xi8, #tpu.memory_space<vmem>>, vector<1x8x8xi8>
    %6 = vector.shape_cast %5 : vector<1x8x8xi8> to vector<8x8xi8>
    %7 = arith.sitofp %6 : vector<8x8xi8> to vector<8x8xf32>
    %cst_10 = arith.constant 1.000000e+00 : f32
    %8 = vector.broadcast %cst_10 : f32 to vector<8x8xf32>
    %9 = arith.subf %8, %7 : vector<8x8xf32>
    %cst_11 = arith.constant -1.76776698E+19 : f32
    %10 = vector.broadcast %cst_11 : f32 to vector<8x8xf32>
    %11 = arith.mulf %9, %10 : vector<8x8xf32>
    %c0_12 = arith.constant 0 : index
    %c0_13 = arith.constant 0 : index
    %c0_14 = arith.constant 0 : index
    %c0_15 = arith.constant 0 : index
    %12 = vector.load %arg2[%c0_12, %c0_13, %c0_14, %c0_15] : memref<2x4x8x8xf32, #tpu.memory_space<vmem>>, vector<1x1x8x8xf32>
    %13 = vector.shape_cast %12 : vector<1x1x8x8xf32> to vector<8x8xf32>
    %cst_16 = arith.constant dense<0.000000e+00> : vector<8x8xf32>
    %14 = tpu.matmul %13, %2, %cst_16 {dimension_numbers = #tpu.dot_dimension_numbers<[1], [0], [0], [1], [0, 0, 1, 1], [], []>} : vector<8x8xf32>, vector<8x8xf32>, vector<8x8xf32> -> vector<8x8xf32>
    %cst_17 = arith.constant 0.176776692 : f32
    %15 = vector.broadcast %cst_17 : f32 to vector<8x8xf32>
    %16 = arith.mulf %14, %15 : vector<8x8xf32>
    %cst_18 = arith.constant dense<0.000000e+00> : vector<8x8xf32>
    %17 = tpu.matmul %13, %3, %cst_18 {dimension_numbers = #tpu.dot_dimension_numbers<[1], [0], [0], [1], [0, 0, 1, 1], [], []>} : vector<8x8xf32>, vector<8x8xf32>, vector<8x8xf32> -> vector<8x8xf32>
    %cst_19 = arith.constant dense<0.000000e+00> : vector<8x8xf32>
    %18 = tpu.matmul %13, %4, %cst_19 {dimension_numbers = #tpu.dot_dimension_numbers<[1], [0], [0], [1], [0, 0, 1, 1], [], []>} : vector<8x8xf32>, vector<8x8xf32>, vector<8x8xf32> -> vector<8x8xf32>
    %cst_20 = arith.constant dense<0.000000e+00> : vector<8x8xf32>
    %19 = tpu.matmul %16, %17, %cst_20 {dimension_numbers = #tpu.dot_dimension_numbers<[1], [1], [0], [0], [0, 0, 1, 0], [], []>} : vector<8x8xf32>, vector<8x8xf32>, vector<8x8xf32> -> vector<8x8xf32>
    %20 = arith.addf %19, %11 : vector<8x8xf32>
    %cst_21 = arith.constant dense<0xFF800000> : vector<8xf32>
    %21 = vector.multi_reduction <maximumf>, %20, %cst_21 [1] : vector<8x8xf32> to vector<8xf32>
    %22 = vector.shape_cast %21 : vector<8xf32> to vector<8x1xf32>
    %23 = vector.broadcast %22 : vector<8x1xf32> to vector<8x8xf32>
    %24 = arith.subf %20, %23 : vector<8x8xf32>
    %25 = math.exp %24 : vector<8x8xf32>
    %cst_22 = arith.constant dense<0.000000e+00> : vector<8xf32>
    %26 = vector.multi_reduction <add>, %25, %cst_22 [1] : vector<8x8xf32> to vector<8xf32>
    %27 = vector.shape_cast %26 : vector<8xf32> to vector<8x1xf32>
    %28 = tpu.reciprocal %27 : vector<8x1xf32> -> vector<8x1xf32>
    %29 = vector.broadcast %28 : vector<8x1xf32> to vector<8x8xf32>
    %30 = arith.mulf %25, %29 : vector<8x8xf32>
    %cst_23 = arith.constant dense<0.000000e+00> : vector<8x8xf32>
    %31 = tpu.matmul %30, %18, %cst_23 {dimension_numbers = #tpu.dot_dimension_numbers<[1], [0], [0], [1], [0, 0, 1, 1], [], []>} : vector<8x8xf32>, vector<8x8xf32>, vector<8x8xf32> -> vector<8x8xf32>
    %c0_24 = arith.constant 0 : index
    %c0_25 = arith.constant 0 : index
    %32 = vector.load %arg7[%c0_24, %c0_25] : memref<32x32xf32, #tpu.memory_space<vmem>>, vector<8x32xf32>
    %c0_26 = arith.constant 0 : index
    %c0_27 = arith.constant 0 : index
    %33 = vector.load %arg18[%c0_26, %c0_27] : memref<16x32xf32, #tpu.memory_space<vmem>>, vector<8x32xf32>
    %cst_28 = arith.constant dense<0.000000e+00> : vector<8x32xf32>
    %34 = tpu.matmul %31, %32, %cst_28 {dimension_numbers = #tpu.dot_dimension_numbers<[1], [0], [0], [1], [0, 0, 1, 1], [], []>} : vector<8x8xf32>, vector<8x32xf32>, vector<8x32xf32> -> vector<8x32xf32>
    %35 = arith.addf %33, %34 : vector<8x32xf32>
    %c0_29 = arith.constant 0 : index
    %c0_30 = arith.constant 0 : index
    %36 = vector.load %arg18[%c0_29, %c0_30] : memref<16x32xf32, #tpu.memory_space<vmem>>, vector<8x32xf32>
    tpu.vector_store %arg18[%c0_29, %c0_30], %35 {strides = array<i32>} : memref<16x32xf32, #tpu.memory_space<vmem>>, vector<8x32xf32>,
    %c0_31 = arith.constant 0 : index
    %c1 = arith.constant 1 : index
    %c0_32 = arith.constant 0 : index
    %c0_33 = arith.constant 0 : index
    %37 = vector.load %arg2[%c0_31, %c1, %c0_32, %c0_33] : memref<2x4x8x8xf32, #tpu.memory_space<vmem>>, vector<1x1x8x8xf32>
    %38 = vector.shape_cast %37 : vector<1x1x8x8xf32> to vector<8x8xf32>
    %cst_34 = arith.constant dense<0.000000e+00> : vector<8x8xf32>
    %39 = tpu.matmul %38, %2, %cst_34 {dimension_numbers = #tpu.dot_dimension_numbers<[1], [0], [0], [1], [0, 0, 1, 1], [], []>} : vector<8x8xf32>, vector<8x8xf32>, vector<8x8xf32> -> vector<8x8xf32>
    %cst_35 = arith.constant 0.176776692 : f32
    %40 = vector.broadcast %cst_35 : f32 to vector<8x8xf32>
    %41 = arith.mulf %39, %40 : vector<8x8xf32>
    %cst_36 = arith.constant dense<0.000000e+00> : vector<8x8xf32>
    %42 = tpu.matmul %38, %3, %cst_36 {dimension_numbers = #tpu.dot_dimension_numbers<[1], [0], [0], [1], [0, 0, 1, 1], [], []>} : vector<8x8xf32>, vector<8x8xf32>, vector<8x8xf32> -> vector<8x8xf32>
    %cst_37 = arith.constant dense<0.000000e+00> : vector<8x8xf32>
    %43 = tpu.matmul %38, %4, %cst_37 {dimension_numbers = #tpu.dot_dimension_numbers<[1], [0], [0], [1], [0, 0, 1, 1], [], []>} : vector<8x8xf32>, vector<8x8xf32>, vector<8x8xf32> -> vector<8x8xf32>
    %cst_38 = arith.constant dense<0.000000e+00> : vector<8x8xf32>
    %44 = tpu.matmul %41, %42, %cst_38 {dimension_numbers = #tpu.dot_dimension_numbers<[1], [1], [0], [0], [0, 0, 1, 0], [], []>} : vector<8x8xf32>, vector<8x8xf32>, vector<8x8xf32> -> vector<8x8xf32>
    %45 = arith.addf %44, %11 : vector<8x8xf32>
    %cst_39 = arith.constant dense<0xFF800000> : vector<8xf32>
    %46 = vector.multi_reduction <maximumf>, %45, %cst_39 [1] : vector<8x8xf32> to vector<8xf32>
    %47 = vector.shape_cast %46 : vector<8xf32> to vector<8x1xf32>
    %48 = vector.broadcast %47 : vector<8x1xf32> to vector<8x8xf32>
    %49 = arith.subf %45, %48 : vector<8x8xf32>
    %50 = math.exp %49 : vector<8x8xf32>
    %cst_40 = arith.constant dense<0.000000e+00> : vector<8xf32>
    %51 = vector.multi_reduction <add>, %50, %cst_40 [1] : vector<8x8xf32> to vector<8xf32>
    %52 = vector.shape_cast %51 : vector<8xf32> to vector<8x1xf32>
    %53 = tpu.reciprocal %52 : vector<8x1xf32> -> vector<8x1xf32>
    %54 = vector.broadcast %53 : vector<8x1xf32> to vector<8x8xf32>
    %55 = arith.mulf %50, %54 : vector<8x8xf32>
    %cst_41 = arith.constant dense<0.000000e+00> : vector<8x8xf32>
    %56 = tpu.matmul %55, %43, %cst_41 {dimension_numbers = #tpu.dot_dimension_numbers<[1], [0], [0], [1], [0, 0, 1, 1], [], []>} : vector<8x8xf32>, vector<8x8xf32>, vector<8x8xf32> -> vector<8x8xf32>
    %c8 = arith.constant 8 : index
    %c0_42 = arith.constant 0 : index
    %57 = vector.load %arg7[%c8, %c0_42] : memref<32x32xf32, #tpu.memory_space<vmem>>, vector<8x32xf32>
    %c0_43 = arith.constant 0 : index
    %c0_44 = arith.constant 0 : index
    %58 = vector.load %arg18[%c0_43, %c0_44] : memref<16x32xf32, #tpu.memory_space<vmem>>, vector<8x32xf32>
    %cst_45 = arith.constant dense<0.000000e+00> : vector<8x32xf32>
    %59 = tpu.matmul %56, %57, %cst_45 {dimension_numbers = #tpu.dot_dimension_numbers<[1], [0], [0], [1], [0, 0, 1, 1], [], []>} : vector<8x8xf32>, vector<8x32xf32>, vector<8x32xf32> -> vector<8x32xf32>
    %60 = arith.addf %58, %59 : vector<8x32xf32>
    %c0_46 = arith.constant 0 : index
    %c0_47 = arith.constant 0 : index
    %61 = vector.load %arg18[%c0_46, %c0_47] : memref<16x32xf32, #tpu.memory_space<vmem>>, vector<8x32xf32>
    tpu.vector_store %arg18[%c0_46, %c0_47], %60 {strides = array<i32>} : memref<16x32xf32, #tpu.memory_space<vmem>>, vector<8x32xf32>,
    %c0_48 = arith.constant 0 : index
    %c2 = arith.constant 2 : index
    %c0_49 = arith.constant 0 : index
    %c0_50 = arith.constant 0 : index
    %62 = vector.load %arg2[%c0_48, %c2, %c0_49, %c0_50] : memref<2x4x8x8xf32, #tpu.memory_space<vmem>>, vector<1x1x8x8xf32>
    %63 = vector.shape_cast %62 : vector<1x1x8x8xf32> to vector<8x8xf32>
    %cst_51 = arith.constant dense<0.000000e+00> : vector<8x8xf32>
    %64 = tpu.matmul %63, %2, %cst_51 {dimension_numbers = #tpu.dot_dimension_numbers<[1], [0], [0], [1], [0, 0, 1, 1], [], []>} : vector<8x8xf32>, vector<8x8xf32>, vector<8x8xf32> -> vector<8x8xf32>
    %cst_52 = arith.constant 0.176776692 : f32
    %65 = vector.broadcast %cst_52 : f32 to vector<8x8xf32>
    %66 = arith.mulf %64, %65 : vector<8x8xf32>
    %cst_53 = arith.constant dense<0.000000e+00> : vector<8x8xf32>
    %67 = tpu.matmul %63, %3, %cst_53 {dimension_numbers = #tpu.dot_dimension_numbers<[1], [0], [0], [1], [0, 0, 1, 1], [], []>} : vector<8x8xf32>, vector<8x8xf32>, vector<8x8xf32> -> vector<8x8xf32>
    %cst_54 = arith.constant dense<0.000000e+00> : vector<8x8xf32>
    %68 = tpu.matmul %63, %4, %cst_54 {dimension_numbers = #tpu.dot_dimension_numbers<[1], [0], [0], [1], [0, 0, 1, 1], [], []>} : vector<8x8xf32>, vector<8x8xf32>, vector<8x8xf32> -> vector<8x8xf32>
    %cst_55 = arith.constant dense<0.000000e+00> : vector<8x8xf32>
    %69 = tpu.matmul %66, %67, %cst_55 {dimension_numbers = #tpu.dot_dimension_numbers<[1], [1], [0], [0], [0, 0, 1, 0], [], []>} : vector<8x8xf32>, vector<8x8xf32>, vector<8x8xf32> -> vector<8x8xf32>
    %70 = arith.addf %69, %11 : vector<8x8xf32>
    %cst_56 = arith.constant dense<0xFF800000> : vector<8xf32>
    %71 = vector.multi_reduction <maximumf>, %70, %cst_56 [1] : vector<8x8xf32> to vector<8xf32>
    %72 = vector.shape_cast %71 : vector<8xf32> to vector<8x1xf32>
    %73 = vector.broadcast %72 : vector<8x1xf32> to vector<8x8xf32>
    %74 = arith.subf %70, %73 : vector<8x8xf32>
    %75 = math.exp %74 : vector<8x8xf32>
    %cst_57 = arith.constant dense<0.000000e+00> : vector<8xf32>
    %76 = vector.multi_reduction <add>, %75, %cst_57 [1] : vector<8x8xf32> to vector<8xf32>
    %77 = vector.shape_cast %76 : vector<8xf32> to vector<8x1xf32>
    %78 = tpu.reciprocal %77 : vector<8x1xf32> -> vector<8x1xf32>
    %79 = vector.broadcast %78 : vector<8x1xf32> to vector<8x8xf32>
    %80 = arith.mulf %75, %79 : vector<8x8xf32>
    %cst_58 = arith.constant dense<0.000000e+00> : vector<8x8xf32>
    %81 = tpu.matmul %80, %68, %cst_58 {dimension_numbers = #tpu.dot_dimension_numbers<[1], [0], [0], [1], [0, 0, 1, 1], [], []>} : vector<8x8xf32>, vector<8x8xf32>, vector<8x8xf32> -> vector<8x8xf32>
    %c16 = arith.constant 16 : index
    %c0_59 = arith.constant 0 : index
    %82 = vector.load %arg7[%c16, %c0_59] : memref<32x32xf32, #tpu.memory_space<vmem>>, vector<8x32xf32>
    %c0_60 = arith.constant 0 : index
    %c0_61 = arith.constant 0 : index
    %83 = vector.load %arg18[%c0_60, %c0_61] : memref<16x32xf32, #tpu.memory_space<vmem>>, vector<8x32xf32>
    %cst_62 = arith.constant dense<0.000000e+00> : vector<8x32xf32>
    %84 = tpu.matmul %81, %82, %cst_62 {dimension_numbers = #tpu.dot_dimension_numbers<[1], [0], [0], [1], [0, 0, 1, 1], [], []>} : vector<8x8xf32>, vector<8x32xf32>, vector<8x32xf32> -> vector<8x32xf32>
    %85 = arith.addf %83, %84 : vector<8x32xf32>
    %c0_63 = arith.constant 0 : index
    %c0_64 = arith.constant 0 : index
    %86 = vector.load %arg18[%c0_63, %c0_64] : memref<16x32xf32, #tpu.memory_space<vmem>>, vector<8x32xf32>
    tpu.vector_store %arg18[%c0_63, %c0_64], %85 {strides = array<i32>} : memref<16x32xf32, #tpu.memory_space<vmem>>, vector<8x32xf32>,
    %c0_65 = arith.constant 0 : index
    %c3 = arith.constant 3 : index
    %c0_66 = arith.constant 0 : index
    %c0_67 = arith.constant 0 : index
    %87 = vector.load %arg2[%c0_65, %c3, %c0_66, %c0_67] : memref<2x4x8x8xf32, #tpu.memory_space<vmem>>, vector<1x1x8x8xf32>
    %88 = vector.shape_cast %87 : vector<1x1x8x8xf32> to vector<8x8xf32>
    %cst_68 = arith.constant dense<0.000000e+00> : vector<8x8xf32>
    %89 = tpu.matmul %88, %2, %cst_68 {dimension_numbers = #tpu.dot_dimension_numbers<[1], [0], [0], [1], [0, 0, 1, 1], [], []>} : vector<8x8xf32>, vector<8x8xf32>, vector<8x8xf32> -> vector<8x8xf32>
    %cst_69 = arith.constant 0.176776692 : f32
    %90 = vector.broadcast %cst_69 : f32 to vector<8x8xf32>
    %91 = arith.mulf %89, %90 : vector<8x8xf32>
    %cst_70 = arith.constant dense<0.000000e+00> : vector<8x8xf32>
    %92 = tpu.matmul %88, %3, %cst_70 {dimension_numbers = #tpu.dot_dimension_numbers<[1], [0], [0], [1], [0, 0, 1, 1], [], []>} : vector<8x8xf32>, vector<8x8xf32>, vector<8x8xf32> -> vector<8x8xf32>
    %cst_71 = arith.constant dense<0.000000e+00> : vector<8x8xf32>
    %93 = tpu.matmul %88, %4, %cst_71 {dimension_numbers = #tpu.dot_dimension_numbers<[1], [0], [0], [1], [0, 0, 1, 1], [], []>} : vector<8x8xf32>, vector<8x8xf32>, vector<8x8xf32> -> vector<8x8xf32>
    %cst_72 = arith.constant dense<0.000000e+00> : vector<8x8xf32>
    %94 = tpu.matmul %91, %92, %cst_72 {dimension_numbers = #tpu.dot_dimension_numbers<[1], [1], [0], [0], [0, 0, 1, 0], [], []>} : vector<8x8xf32>, vector<8x8xf32>, vector<8x8xf32> -> vector<8x8xf32>
    %95 = arith.addf %94, %11 : vector<8x8xf32>
    %cst_73 = arith.constant dense<0xFF800000> : vector<8xf32>
    %96 = vector.multi_reduction <maximumf>, %95, %cst_73 [1] : vector<8x8xf32> to vector<8xf32>
    %97 = vector.shape_cast %96 : vector<8xf32> to vector<8x1xf32>
    %98 = vector.broadcast %97 : vector<8x1xf32> to vector<8x8xf32>
    %99 = arith.subf %95, %98 : vector<8x8xf32>
    %100 = math.exp %99 : vector<8x8xf32>
    %cst_74 = arith.constant dense<0.000000e+00> : vector<8xf32>
    %101 = vector.multi_reduction <add>, %100, %cst_74 [1] : vector<8x8xf32> to vector<8xf32>
    %102 = vector.shape_cast %101 : vector<8xf32> to vector<8x1xf32>
    %103 = tpu.reciprocal %102 : vector<8x1xf32> -> vector<8x1xf32>
    %104 = vector.broadcast %103 : vector<8x1xf32> to vector<8x8xf32>
    %105 = arith.mulf %100, %104 : vector<8x8xf32>
    %cst_75 = arith.constant dense<0.000000e+00> : vector<8x8xf32>
    %106 = tpu.matmul %105, %93, %cst_75 {dimension_numbers = #tpu.dot_dimension_numbers<[1], [0], [0], [1], [0, 0, 1, 1], [], []>} : vector<8x8xf32>, vector<8x8xf32>, vector<8x8xf32> -> vector<8x8xf32>
    %c24 = arith.constant 24 : index
    %c0_76 = arith.constant 0 : index
    %107 = vector.load %arg7[%c24, %c0_76] : memref<32x32xf32, #tpu.memory_space<vmem>>, vector<8x32xf32>
    %c0_77 = arith.constant 0 : index
    %c0_78 = arith.constant 0 : index
    %108 = vector.load %arg18[%c0_77, %c0_78] : memref<16x32xf32, #tpu.memory_space<vmem>>, vector<8x32xf32>
    %cst_79 = arith.constant dense<0.000000e+00> : vector<8x32xf32>
    %109 = tpu.matmul %106, %107, %cst_79 {dimension_numbers = #tpu.dot_dimension_numbers<[1], [0], [0], [1], [0, 0, 1, 1], [], []>} : vector<8x8xf32>, vector<8x32xf32>, vector<8x32xf32> -> vector<8x32xf32>
    %110 = arith.addf %108, %109 : vector<8x32xf32>
    %c0_80 = arith.constant 0 : index
    %c0_81 = arith.constant 0 : index
    %111 = vector.load %arg18[%c0_80, %c0_81] : memref<16x32xf32, #tpu.memory_space<vmem>>, vector<8x32xf32>
    tpu.vector_store %arg18[%c0_80, %c0_81], %110 {strides = array<i32>} : memref<16x32xf32, #tpu.memory_space<vmem>>, vector<8x32xf32>,
    %c1_82 = arith.constant 1 : index
    %c0_83 = arith.constant 0 : index
    %c0_84 = arith.constant 0 : index
    %112 = vector.load %arg3[%c1_82, %c0_83, %c0_84] : memref<2x8x8xi8, #tpu.memory_space<vmem>>, vector<1x8x8xi8>
    %113 = vector.shape_cast %112 : vector<1x8x8xi8> to vector<8x8xi8>
    %114 = arith.sitofp %113 : vector<8x8xi8> to vector<8x8xf32>
    %cst_85 = arith.constant 1.000000e+00 : f32
    %115 = vector.broadcast %cst_85 : f32 to vector<8x8xf32>
    %116 = arith.subf %115, %114 : vector<8x8xf32>
    %cst_86 = arith.constant -1.76776698E+19 : f32
    %117 = vector.broadcast %cst_86 : f32 to vector<8x8xf32>
    %118 = arith.mulf %116, %117 : vector<8x8xf32>
    %c1_87 = arith.constant 1 : index
    %c0_88 = arith.constant 0 : index
    %c0_89 = arith.constant 0 : index
    %c0_90 = arith.constant 0 : index
    %119 = vector.load %arg2[%c1_87, %c0_88, %c0_89, %c0_90] : memref<2x4x8x8xf32, #tpu.memory_space<vmem>>, vector<1x1x8x8xf32>
    %120 = vector.shape_cast %119 : vector<1x1x8x8xf32> to vector<8x8xf32>
    %cst_91 = arith.constant dense<0.000000e+00> : vector<8x8xf32>
    %121 = tpu.matmul %120, %2, %cst_91 {dimension_numbers = #tpu.dot_dimension_numbers<[1], [0], [0], [1], [0, 0, 1, 1], [], []>} : vector<8x8xf32>, vector<8x8xf32>, vector<8x8xf32> -> vector<8x8xf32>
    %cst_92 = arith.constant 0.176776692 : f32
    %122 = vector.broadcast %cst_92 : f32 to vector<8x8xf32>
    %123 = arith.mulf %121, %122 : vector<8x8xf32>
    %cst_93 = arith.constant dense<0.000000e+00> : vector<8x8xf32>
    %124 = tpu.matmul %120, %3, %cst_93 {dimension_numbers = #tpu.dot_dimension_numbers<[1], [0], [0], [1], [0, 0, 1, 1], [], []>} : vector<8x8xf32>, vector<8x8xf32>, vector<8x8xf32> -> vector<8x8xf32>
    %cst_94 = arith.constant dense<0.000000e+00> : vector<8x8xf32>
    %125 = tpu.matmul %120, %4, %cst_94 {dimension_numbers = #tpu.dot_dimension_numbers<[1], [0], [0], [1], [0, 0, 1, 1], [], []>} : vector<8x8xf32>, vector<8x8xf32>, vector<8x8xf32> -> vector<8x8xf32>
    %cst_95 = arith.constant dense<0.000000e+00> : vector<8x8xf32>
    %126 = tpu.matmul %123, %124, %cst_95 {dimension_numbers = #tpu.dot_dimension_numbers<[1], [1], [0], [0], [0, 0, 1, 0], [], []>} : vector<8x8xf32>, vector<8x8xf32>, vector<8x8xf32> -> vector<8x8xf32>
    %127 = arith.addf %126, %118 : vector<8x8xf32>
    %cst_96 = arith.constant dense<0xFF800000> : vector<8xf32>
    %128 = vector.multi_reduction <maximumf>, %127, %cst_96 [1] : vector<8x8xf32> to vector<8xf32>
    %129 = vector.shape_cast %128 : vector<8xf32> to vector<8x1xf32>
    %130 = vector.broadcast %129 : vector<8x1xf32> to vector<8x8xf32>
    %131 = arith.subf %127, %130 : vector<8x8xf32>
    %132 = math.exp %131 : vector<8x8xf32>
    %cst_97 = arith.constant dense<0.000000e+00> : vector<8xf32>
    %133 = vector.multi_reduction <add>, %132, %cst_97 [1] : vector<8x8xf32> to vector<8xf32>
    %134 = vector.shape_cast %133 : vector<8xf32> to vector<8x1xf32>
    %135 = tpu.reciprocal %134 : vector<8x1xf32> -> vector<8x1xf32>
    %136 = vector.broadcast %135 : vector<8x1xf32> to vector<8x8xf32>
    %137 = arith.mulf %132, %136 : vector<8x8xf32>
    %cst_98 = arith.constant dense<0.000000e+00> : vector<8x8xf32>
    %138 = tpu.matmul %137, %125, %cst_98 {dimension_numbers = #tpu.dot_dimension_numbers<[1], [0], [0], [1], [0, 0, 1, 1], [], []>} : vector<8x8xf32>, vector<8x8xf32>, vector<8x8xf32> -> vector<8x8xf32>
    %c0_99 = arith.constant 0 : index
    %c0_100 = arith.constant 0 : index
    %139 = vector.load %arg7[%c0_99, %c0_100] : memref<32x32xf32, #tpu.memory_space<vmem>>, vector<8x32xf32>
    %c8_101 = arith.constant 8 : index
    %c0_102 = arith.constant 0 : index
    %140 = vector.load %arg18[%c8_101, %c0_102] : memref<16x32xf32, #tpu.memory_space<vmem>>, vector<8x32xf32>
    %cst_103 = arith.constant dense<0.000000e+00> : vector<8x32xf32>
    %141 = tpu.matmul %138, %139, %cst_103 {dimension_numbers = #tpu.dot_dimension_numbers<[1], [0], [0], [1], [0, 0, 1, 1], [], []>} : vector<8x8xf32>, vector<8x32xf32>, vector<8x32xf32> -> vector<8x32xf32>
    %142 = arith.addf %140, %141 : vector<8x32xf32>
    %c8_104 = arith.constant 8 : index
    %c0_105 = arith.constant 0 : index
    %143 = vector.load %arg18[%c8_104, %c0_105] : memref<16x32xf32, #tpu.memory_space<vmem>>, vector<8x32xf32>
    tpu.vector_store %arg18[%c8_104, %c0_105], %142 {strides = array<i32>} : memref<16x32xf32, #tpu.memory_space<vmem>>, vector<8x32xf32>,
    %c1_106 = arith.constant 1 : index
    %c1_107 = arith.constant 1 : index
    %c0_108 = arith.constant 0 : index
    %c0_109 = arith.constant 0 : index
    %144 = vector.load %arg2[%c1_106, %c1_107, %c0_108, %c0_109] : memref<2x4x8x8xf32, #tpu.memory_space<vmem>>, vector<1x1x8x8xf32>
    %145 = vector.shape_cast %144 : vector<1x1x8x8xf32> to vector<8x8xf32>
    %cst_110 = arith.constant dense<0.000000e+00> : vector<8x8xf32>
    %146 = tpu.matmul %145, %2, %cst_110 {dimension_numbers = #tpu.dot_dimension_numbers<[1], [0], [0], [1], [0, 0, 1, 1], [], []>} : vector<8x8xf32>, vector<8x8xf32>, vector<8x8xf32> -> vector<8x8xf32>
    %cst_111 = arith.constant 0.176776692 : f32
    %147 = vector.broadcast %cst_111 : f32 to vector<8x8xf32>
    %148 = arith.mulf %146, %147 : vector<8x8xf32>
    %cst_112 = arith.constant dense<0.000000e+00> : vector<8x8xf32>
    %149 = tpu.matmul %145, %3, %cst_112 {dimension_numbers = #tpu.dot_dimension_numbers<[1], [0], [0], [1], [0, 0, 1, 1], [], []>} : vector<8x8xf32>, vector<8x8xf32>, vector<8x8xf32> -> vector<8x8xf32>
    %cst_113 = arith.constant dense<0.000000e+00> : vector<8x8xf32>
    %150 = tpu.matmul %145, %4, %cst_113 {dimension_numbers = #tpu.dot_dimension_numbers<[1], [0], [0], [1], [0, 0, 1, 1], [], []>} : vector<8x8xf32>, vector<8x8xf32>, vector<8x8xf32> -> vector<8x8xf32>
    %cst_114 = arith.constant dense<0.000000e+00> : vector<8x8xf32>
    %151 = tpu.matmul %148, %149, %cst_114 {dimension_numbers = #tpu.dot_dimension_numbers<[1], [1], [0], [0], [0, 0, 1, 0], [], []>} : vector<8x8xf32>, vector<8x8xf32>, vector<8x8xf32> -> vector<8x8xf32>
    %152 = arith.addf %151, %118 : vector<8x8xf32>
    %cst_115 = arith.constant dense<0xFF800000> : vector<8xf32>
    %153 = vector.multi_reduction <maximumf>, %152, %cst_115 [1] : vector<8x8xf32> to vector<8xf32>
    %154 = vector.shape_cast %153 : vector<8xf32> to vector<8x1xf32>
    %155 = vector.broadcast %154 : vector<8x1xf32> to vector<8x8xf32>
    %156 = arith.subf %152, %155 : vector<8x8xf32>
    %157 = math.exp %156 : vector<8x8xf32>
    %cst_116 = arith.constant dense<0.000000e+00> : vector<8xf32>
    %158 = vector.multi_reduction <add>, %157, %cst_116 [1] : vector<8x8xf32> to vector<8xf32>
    %159 = vector.shape_cast %158 : vector<8xf32> to vector<8x1xf32>
    %160 = tpu.reciprocal %159 : vector<8x1xf32> -> vector<8x1xf32>
    %161 = vector.broadcast %160 : vector<8x1xf32> to vector<8x8xf32>
    %162 = arith.mulf %157, %161 : vector<8x8xf32>
    %cst_117 = arith.constant dense<0.000000e+00> : vector<8x8xf32>
    %163 = tpu.matmul %162, %150, %cst_117 {dimension_numbers = #tpu.dot_dimension_numbers<[1], [0], [0], [1], [0, 0, 1, 1], [], []>} : vector<8x8xf32>, vector<8x8xf32>, vector<8x8xf32> -> vector<8x8xf32>
    %c8_118 = arith.constant 8 : index
    %c0_119 = arith.constant 0 : index
    %164 = vector.load %arg7[%c8_118, %c0_119] : memref<32x32xf32, #tpu.memory_space<vmem>>, vector<8x32xf32>
    %c8_120 = arith.constant 8 : index
    %c0_121 = arith.constant 0 : index
    %165 = vector.load %arg18[%c8_120, %c0_121] : memref<16x32xf32, #tpu.memory_space<vmem>>, vector<8x32xf32>
    %cst_122 = arith.constant dense<0.000000e+00> : vector<8x32xf32>
    %166 = tpu.matmul %163, %164, %cst_122 {dimension_numbers = #tpu.dot_dimension_numbers<[1], [0], [0], [1], [0, 0, 1, 1], [], []>} : vector<8x8xf32>, vector<8x32xf32>, vector<8x32xf32> -> vector<8x32xf32>
    %167 = arith.addf %165, %166 : vector<8x32xf32>
    %c8_123 = arith.constant 8 : index
    %c0_124 = arith.constant 0 : index
    %168 = vector.load %arg18[%c8_123, %c0_124] : memref<16x32xf32, #tpu.memory_space<vmem>>, vector<8x32xf32>
    tpu.vector_store %arg18[%c8_123, %c0_124], %167 {strides = array<i32>} : memref<16x32xf32, #tpu.memory_space<vmem>>, vector<8x32xf32>,
    %c1_125 = arith.constant 1 : index
    %c2_126 = arith.constant 2 : index
    %c0_127 = arith.constant 0 : index
    %c0_128 = arith.constant 0 : index
    %169 = vector.load %arg2[%c1_125, %c2_126, %c0_127, %c0_128] : memref<2x4x8x8xf32, #tpu.memory_space<vmem>>, vector<1x1x8x8xf32>
    %170 = vector.shape_cast %169 : vector<1x1x8x8xf32> to vector<8x8xf32>
    %cst_129 = arith.constant dense<0.000000e+00> : vector<8x8xf32>
    %171 = tpu.matmul %170, %2, %cst_129 {dimension_numbers = #tpu.dot_dimension_numbers<[1], [0], [0], [1], [0, 0, 1, 1], [], []>} : vector<8x8xf32>, vector<8x8xf32>, vector<8x8xf32> -> vector<8x8xf32>
    %cst_130 = arith.constant 0.176776692 : f32
    %172 = vector.broadcast %cst_130 : f32 to vector<8x8xf32>
    %173 = arith.mulf %171, %172 : vector<8x8xf32>
    %cst_131 = arith.constant dense<0.000000e+00> : vector<8x8xf32>
    %174 = tpu.matmul %170, %3, %cst_131 {dimension_numbers = #tpu.dot_dimension_numbers<[1], [0], [0], [1], [0, 0, 1, 1], [], []>} : vector<8x8xf32>, vector<8x8xf32>, vector<8x8xf32> -> vector<8x8xf32>
    %cst_132 = arith.constant dense<0.000000e+00> : vector<8x8xf32>
    %175 = tpu.matmul %170, %4, %cst_132 {dimension_numbers = #tpu.dot_dimension_numbers<[1], [0], [0], [1], [0, 0, 1, 1], [], []>} : vector<8x8xf32>, vector<8x8xf32>, vector<8x8xf32> -> vector<8x8xf32>
    %cst_133 = arith.constant dense<0.000000e+00> : vector<8x8xf32>
    %176 = tpu.matmul %173, %174, %cst_133 {dimension_numbers = #tpu.dot_dimension_numbers<[1], [1], [0], [0], [0, 0, 1, 0], [], []>} : vector<8x8xf32>, vector<8x8xf32>, vector<8x8xf32> -> vector<8x8xf32>
    %177 = arith.addf %176, %118 : vector<8x8xf32>
    %cst_134 = arith.constant dense<0xFF800000> : vector<8xf32>
    %178 = vector.multi_reduction <maximumf>, %177, %cst_134 [1] : vector<8x8xf32> to vector<8xf32>
    %179 = vector.shape_cast %178 : vector<8xf32> to vector<8x1xf32>
    %180 = vector.broadcast %179 : vector<8x1xf32> to vector<8x8xf32>
    %181 = arith.subf %177, %180 : vector<8x8xf32>
    %182 = math.exp %181 : vector<8x8xf32>
    %cst_135 = arith.constant dense<0.000000e+00> : vector<8xf32>
    %183 = vector.multi_reduction <add>, %182, %cst_135 [1] : vector<8x8xf32> to vector<8xf32>
    %184 = vector.shape_cast %183 : vector<8xf32> to vector<8x1xf32>
    %185 = tpu.reciprocal %184 : vector<8x1xf32> -> vector<8x1xf32>
    %186 = vector.broadcast %185 : vector<8x1xf32> to vector<8x8xf32>
    %187 = arith.mulf %182, %186 : vector<8x8xf32>
    %cst_136 = arith.constant dense<0.000000e+00> : vector<8x8xf32>
    %188 = tpu.matmul %187, %175, %cst_136 {dimension_numbers = #tpu.dot_dimension_numbers<[1], [0], [0], [1], [0, 0, 1, 1], [], []>} : vector<8x8xf32>, vector<8x8xf32>, vector<8x8xf32> -> vector<8x8xf32>
    %c16_137 = arith.constant 16 : index
    %c0_138 = arith.constant 0 : index
    %189 = vector.load %arg7[%c16_137, %c0_138] : memref<32x32xf32, #tpu.memory_space<vmem>>, vector<8x32xf32>
    %c8_139 = arith.constant 8 : index
    %c0_140 = arith.constant 0 : index
    %190 = vector.load %arg18[%c8_139, %c0_140] : memref<16x32xf32, #tpu.memory_space<vmem>>, vector<8x32xf32>
    %cst_141 = arith.constant dense<0.000000e+00> : vector<8x32xf32>
    %191 = tpu.matmul %188, %189, %cst_141 {dimension_numbers = #tpu.dot_dimension_numbers<[1], [0], [0], [1], [0, 0, 1, 1], [], []>} : vector<8x8xf32>, vector<8x32xf32>, vector<8x32xf32> -> vector<8x32xf32>
    %192 = arith.addf %190, %191 : vector<8x32xf32>
    %c8_142 = arith.constant 8 : index
    %c0_143 = arith.constant 0 : index
    %193 = vector.load %arg18[%c8_142, %c0_143] : memref<16x32xf32, #tpu.memory_space<vmem>>, vector<8x32xf32>
    tpu.vector_store %arg18[%c8_142, %c0_143], %192 {strides = array<i32>} : memref<16x32xf32, #tpu.memory_space<vmem>>, vector<8x32xf32>,
    %c1_144 = arith.constant 1 : index
    %c3_145 = arith.constant 3 : index
    %c0_146 = arith.constant 0 : index
    %c0_147 = arith.constant 0 : index
    %194 = vector.load %arg2[%c1_144, %c3_145, %c0_146, %c0_147] : memref<2x4x8x8xf32, #tpu.memory_space<vmem>>, vector<1x1x8x8xf32>
    %195 = vector.shape_cast %194 : vector<1x1x8x8xf32> to vector<8x8xf32>
    %cst_148 = arith.constant dense<0.000000e+00> : vector<8x8xf32>
    %196 = tpu.matmul %195, %2, %cst_148 {dimension_numbers = #tpu.dot_dimension_numbers<[1], [0], [0], [1], [0, 0, 1, 1], [], []>} : vector<8x8xf32>, vector<8x8xf32>, vector<8x8xf32> -> vector<8x8xf32>
    %cst_149 = arith.constant 0.176776692 : f32
    %197 = vector.broadcast %cst_149 : f32 to vector<8x8xf32>
    %198 = arith.mulf %196, %197 : vector<8x8xf32>
    %cst_150 = arith.constant dense<0.000000e+00> : vector<8x8xf32>
    %199 = tpu.matmul %195, %3, %cst_150 {dimension_numbers = #tpu.dot_dimension_numbers<[1], [0], [0], [1], [0, 0, 1, 1], [], []>} : vector<8x8xf32>, vector<8x8xf32>, vector<8x8xf32> -> vector<8x8xf32>
    %cst_151 = arith.constant dense<0.000000e+00> : vector<8x8xf32>
    %200 = tpu.matmul %195, %4, %cst_151 {dimension_numbers = #tpu.dot_dimension_numbers<[1], [0], [0], [1], [0, 0, 1, 1], [], []>} : vector<8x8xf32>, vector<8x8xf32>, vector<8x8xf32> -> vector<8x8xf32>
    %cst_152 = arith.constant dense<0.000000e+00> : vector<8x8xf32>
    %201 = tpu.matmul %198, %199, %cst_152 {dimension_numbers = #tpu.dot_dimension_numbers<[1], [1], [0], [0], [0, 0, 1, 0], [], []>} : vector<8x8xf32>, vector<8x8xf32>, vector<8x8xf32> -> vector<8x8xf32>
    %202 = arith.addf %201, %118 : vector<8x8xf32>
    %cst_153 = arith.constant dense<0xFF800000> : vector<8xf32>
    %203 = vector.multi_reduction <maximumf>, %202, %cst_153 [1] : vector<8x8xf32> to vector<8xf32>
    %204 = vector.shape_cast %203 : vector<8xf32> to vector<8x1xf32>
    %205 = vector.broadcast %204 : vector<8x1xf32> to vector<8x8xf32>
    %206 = arith.subf %202, %205 : vector<8x8xf32>
    %207 = math.exp %206 : vector<8x8xf32>
    %cst_154 = arith.constant dense<0.000000e+00> : vector<8xf32>
    %208 = vector.multi_reduction <add>, %207, %cst_154 [1] : vector<8x8xf32> to vector<8xf32>
    %209 = vector.shape_cast %208 : vector<8xf32> to vector<8x1xf32>
    %210 = tpu.reciprocal %209 : vector<8x1xf32> -> vector<8x1xf32>
    %211 = vector.broadcast %210 : vector<8x1xf32> to vector<8x8xf32>
    %212 = arith.mulf %207, %211 : vector<8x8xf32>
    %cst_155 = arith.constant dense<0.000000e+00> : vector<8x8xf32>
    %213 = tpu.matmul %212, %200, %cst_155 {dimension_numbers = #tpu.dot_dimension_numbers<[1], [0], [0], [1], [0, 0, 1, 1], [], []>} : vector<8x8xf32>, vector<8x8xf32>, vector<8x8xf32> -> vector<8x8xf32>
    %c24_156 = arith.constant 24 : index
    %c0_157 = arith.constant 0 : index
    %214 = vector.load %arg7[%c24_156, %c0_157] : memref<32x32xf32, #tpu.memory_space<vmem>>, vector<8x32xf32>
    %c8_158 = arith.constant 8 : index
    %c0_159 = arith.constant 0 : index
    %215 = vector.load %arg18[%c8_158, %c0_159] : memref<16x32xf32, #tpu.memory_space<vmem>>, vector<8x32xf32>
    %cst_160 = arith.constant dense<0.000000e+00> : vector<8x32xf32>
    %216 = tpu.matmul %213, %214, %cst_160 {dimension_numbers = #tpu.dot_dimension_numbers<[1], [0], [0], [1], [0, 0, 1, 1], [], []>} : vector<8x8xf32>, vector<8x32xf32>, vector<8x32xf32> -> vector<8x32xf32>
    %217 = arith.addf %215, %216 : vector<8x32xf32>
    %c8_161 = arith.constant 8 : index
    %c0_162 = arith.constant 0 : index
    %218 = vector.load %arg18[%c8_161, %c0_162] : memref<16x32xf32, #tpu.memory_space<vmem>>, vector<8x32xf32>
    tpu.vector_store %arg18[%c8_161, %c0_162], %217 {strides = array<i32>} : memref<16x32xf32, #tpu.memory_space<vmem>>, vector<8x32xf32>,
    %c0_163 = arith.constant 0 : index
    %c0_164 = arith.constant 0 : index
    %219 = vector.load %arg1[%c0_163, %c0_164] : memref<16x32xf32, #tpu.memory_space<vmem>>, vector<16x32xf32>
    %c0_165 = arith.constant 0 : index
    %c0_166 = arith.constant 0 : index
    %220 = vector.load %arg18[%c0_165, %c0_166] : memref<16x32xf32, #tpu.memory_space<vmem>>, vector<16x32xf32>
    %c0_167 = arith.constant 0 : index
    %c0_168 = arith.constant 0 : index
    %221 = vector.load %arg8[%c0_167, %c0_168] : memref<1x32xf32, #tpu.memory_space<vmem>>, vector<1x32xf32>
    %222 = vector.broadcast %221 : vector<1x32xf32> to vector<16x32xf32>
    %223 = arith.addf %220, %222 : vector<16x32xf32>
    %224 = arith.addf %223, %219 : vector<16x32xf32>
    %c0_169 = arith.constant 0 : index
    %c0_170 = arith.constant 0 : index
    %225 = vector.load %arg9[%c0_169, %c0_170] : memref<1x32xf32, #tpu.memory_space<vmem>>, vector<1x32xf32>
    %c0_171 = arith.constant 0 : index
    %c0_172 = arith.constant 0 : index
    %226 = vector.load %arg10[%c0_171, %c0_172] : memref<1x32xf32, #tpu.memory_space<vmem>>, vector<1x32xf32>
    %cst_173 = arith.constant dense<0.000000e+00> : vector<16xf32>
    %227 = vector.multi_reduction <add>, %224, %cst_173 [1] : vector<16x32xf32> to vector<16xf32>
    %228 = vector.shape_cast %227 : vector<16xf32> to vector<16x1xf32>
    %cst_174 = arith.constant 3.200000e+01 : f32
    %229 = vector.broadcast %cst_174 : f32 to vector<16x1xf32>
    %230 = arith.divf %228, %229 : vector<16x1xf32>
    %231 = vector.broadcast %230 : vector<16x1xf32> to vector<16x32xf32>
    %232 = arith.subf %224, %231 : vector<16x32xf32>
    %233 = arith.mulf %232, %232 : vector<16x32xf32>
    %cst_175 = arith.constant dense<0.000000e+00> : vector<16xf32>
    %234 = vector.multi_reduction <add>, %233, %cst_175 [1] : vector<16x32xf32> to vector<16xf32>
    %235 = vector.shape_cast %234 : vector<16xf32> to vector<16x1xf32>
    %cst_176 = arith.constant 3.200000e+01 : f32
    %236 = vector.broadcast %cst_176 : f32 to vector<16x1xf32>
    %237 = arith.divf %235, %236 : vector<16x1xf32>
    %238 = vector.broadcast %230 : vector<16x1xf32> to vector<16x32xf32>
    %239 = arith.subf %224, %238 : vector<16x32xf32>
    %cst_177 = arith.constant 9.99999974E-6 : f32
    %240 = vector.broadcast %cst_177 : f32 to vector<16x1xf32>
    %241 = arith.addf %237, %240 : vector<16x1xf32>
    %242 = math.rsqrt %241 : vector<16x1xf32>
    %243 = vector.broadcast %242 : vector<16x1xf32> to vector<16x32xf32>
    %244 = arith.mulf %239, %243 : vector<16x32xf32>
    %245 = vector.broadcast %225 : vector<1x32xf32> to vector<16x32xf32>
    %246 = arith.mulf %244, %245 : vector<16x32xf32>
    %247 = vector.broadcast %226 : vector<1x32xf32> to vector<16x32xf32>
    %248 = arith.addf %246, %247 : vector<16x32xf32>
    %c0_178 = arith.constant 0 : index
    %c0_179 = arith.constant 0 : index
    %249 = vector.load %arg11[%c0_178, %c0_179] : memref<32x128xf32, #tpu.memory_space<vmem>>, vector<32x128xf32>
    %cst_180 = arith.constant dense<0.000000e+00> : vector<16x128xf32>
    %250 = tpu.matmul %248, %249, %cst_180 {dimension_numbers = #tpu.dot_dimension_numbers<[1], [0], [0], [1], [0, 0, 1, 1], [], []>} : vector<16x32xf32>, vector<32x128xf32>, vector<16x128xf32> -> vector<16x128xf32>
    %c0_181 = arith.constant 0 : index
    %c0_182 = arith.constant 0 : index
    %251 = vector.load %arg12[%c0_181, %c0_182] : memref<1x128xf32, #tpu.memory_space<vmem>>, vector<1x128xf32>
    %252 = vector.broadcast %251 : vector<1x128xf32> to vector<16x128xf32>
    %253 = arith.addf %250, %252 : vector<16x128xf32>
    %cst_183 = arith.constant 0.000000e+00 : f32
    %254 = vector.broadcast %cst_183 : f32 to vector<16x128xf32>
    %255 = arith.maximumf %253, %254 : vector<16x128xf32>
    %c0_184 = arith.constant 0 : index
    %c0_185 = arith.constant 0 : index
    %256 = vector.load %arg13[%c0_184, %c0_185] : memref<128x32xf32, #tpu.memory_space<vmem>>, vector<128x32xf32>
    %cst_186 = arith.constant dense<0.000000e+00> : vector<16x32xf32>
    %257 = tpu.matmul %255, %256, %cst_186 {dimension_numbers = #tpu.dot_dimension_numbers<[1], [0], [0], [1], [0, 0, 1, 1], [], []>} : vector<16x128xf32>, vector<128x32xf32>, vector<16x32xf32> -> vector<16x32xf32>
    %c0_187 = arith.constant 0 : index
    %c0_188 = arith.constant 0 : index
    %258 = vector.load %arg14[%c0_187, %c0_188] : memref<1x32xf32, #tpu.memory_space<vmem>>, vector<1x32xf32>
    %259 = vector.broadcast %258 : vector<1x32xf32> to vector<16x32xf32>
    %260 = arith.addf %257, %259 : vector<16x32xf32>
    %261 = arith.addf %260, %248 : vector<16x32xf32>
    %c0_189 = arith.constant 0 : index
    %c0_190 = arith.constant 0 : index
    %262 = vector.load %arg15[%c0_189, %c0_190] : memref<1x32xf32, #tpu.memory_space<vmem>>, vector<1x32xf32>
    %c0_191 = arith.constant 0 : index
    %c0_192 = arith.constant 0 : index
    %263 = vector.load %arg16[%c0_191, %c0_192] : memref<1x32xf32, #tpu.memory_space<vmem>>, vector<1x32xf32>
    %cst_193 = arith.constant dense<0.000000e+00> : vector<16xf32>
    %264 = vector.multi_reduction <add>, %261, %cst_193 [1] : vector<16x32xf32> to vector<16xf32>
    %265 = vector.shape_cast %264 : vector<16xf32> to vector<16x1xf32>
    %cst_194 = arith.constant 3.200000e+01 : f32
    %266 = vector.broadcast %cst_194 : f32 to vector<16x1xf32>
    %267 = arith.divf %265, %266 : vector<16x1xf32>
    %268 = vector.broadcast %267 : vector<16x1xf32> to vector<16x32xf32>
    %269 = arith.subf %261, %268 : vector<16x32xf32>
    %270 = arith.mulf %269, %269 : vector<16x32xf32>
    %cst_195 = arith.constant dense<0.000000e+00> : vector<16xf32>
    %271 = vector.multi_reduction <add>, %270, %cst_195 [1] : vector<16x32xf32> to vector<16xf32>
    %272 = vector.shape_cast %271 : vector<16xf32> to vector<16x1xf32>
    %cst_196 = arith.constant 3.200000e+01 : f32
    %273 = vector.broadcast %cst_196 : f32 to vector<16x1xf32>
    %274 = arith.divf %272, %273 : vector<16x1xf32>
    %275 = vector.broadcast %267 : vector<16x1xf32> to vector<16x32xf32>
    %276 = arith.subf %261, %275 : vector<16x32xf32>
    %cst_197 = arith.constant 9.99999974E-6 : f32
    %277 = vector.broadcast %cst_197 : f32 to vector<16x1xf32>
    %278 = arith.addf %274, %277 : vector<16x1xf32>
    %279 = math.rsqrt %278 : vector<16x1xf32>
    %280 = vector.broadcast %279 : vector<16x1xf32> to vector<16x32xf32>
    %281 = arith.mulf %276, %280 : vector<16x32xf32>
    %282 = vector.broadcast %262 : vector<1x32xf32> to vector<16x32xf32>
    %283 = arith.mulf %281, %282 : vector<16x32xf32>
    %284 = vector.broadcast %263 : vector<1x32xf32> to vector<16x32xf32>
    %285 = arith.addf %283, %284 : vector<16x32xf32>
    %c0_198 = arith.constant 0 : index
    %c0_199 = arith.constant 0 : index
    %286 = vector.load %arg17[%c0_198, %c0_199] : memref<16x32xf32, #tpu.memory_space<vmem>>, vector<16x32xf32>
    tpu.vector_store %arg17[%c0_198, %c0_199], %285 {strides = array<i32>} : memref<16x32xf32, #tpu.memory_space<vmem>>, vector<16x32xf32>,
    return
  }
  func.func @transform_0(%arg0: i32) -> (i32, i32) {
    %c0_i32 = arith.constant 0 : i32
    %c0_i32_0 = arith.constant 0 : i32
    return %arg0, %c0_i32 : i32, i32
  }
  func.func @transform_1(%arg0: i32) -> (i32, i32, i32, i32) {
    %c0_i32 = arith.constant 0 : i32
    %c0_i32_0 = arith.constant 0 : i32
    %c0_i32_1 = arith.constant 0 : i32
    %c0_i32_2 = arith.constant 0 : i32
    return %arg0, %c0_i32, %c0_i32_0, %c0_i32_1 : i32, i32, i32, i32
  }
  func.func @transform_2(%arg0: i32) -> (i32, i32, i32) {
    %c0_i32 = arith.constant 0 : i32
    %c0_i32_0 = arith.constant 0 : i32
    %c0_i32_1 = arith.constant 0 : i32
    return %arg0, %c0_i32, %c0_i32_0 : i32, i32, i32
  }
  func.func @transform_3(%arg0: i32) -> (i32, i32) {
    %c0_i32 = arith.constant 0 : i32
    %c0_i32_0 = arith.constant 0 : i32
    %c0_i32_1 = arith.constant 0 : i32
    return %c0_i32, %c0_i32_0 : i32, i32
  }
  func.func @transform_4(%arg0: i32) -> (i32, i32) {
    %c0_i32 = arith.constant 0 : i32
    %c0_i32_0 = arith.constant 0 : i32
    %c0_i32_1 = arith.constant 0 : i32
    return %c0_i32, %c0_i32_0 : i32, i32
  }
  func.func @transform_5(%arg0: i32) -> (i32, i32) {
    %c0_i32 = arith.constant 0 : i32
    %c0_i32_0 = arith.constant 0 : i32
    %c0_i32_1 = arith.constant 0 : i32
    return %c0_i32, %c0_i32_0 : i32, i32
  }
  func.func @transform_6(%arg0: i32) -> (i32, i32) {
    %c0_i32 = arith.constant 0 : i32
    %c0_i32_0 = arith.constant 0 : i32
    %c0_i32_1 = arith.constant 0 : i32
    return %c0_i32, %c0_i32_0 : i32, i32
  }
  func.func @transform_7(%arg0: i32) -> (i32, i32) {
    %c0_i32 = arith.constant 0 : i32
    %c0_i32_0 = arith.constant 0 : i32
    %c0_i32_1 = arith.constant 0 : i32
    return %c0_i32, %c0_i32_0 : i32, i32
  }
  func.func @transform_8(%arg0: i32) -> (i32, i32) {
    %c0_i32 = arith.constant 0 : i32
    %c0_i32_0 = arith.constant 0 : i32
    %c0_i32_1 = arith.constant 0 : i32
    return %c0_i32, %c0_i32_0 : i32, i32
  }
  func.func @transform_9(%arg0: i32) -> (i32, i32) {
    %c0_i32 = arith.constant 0 : i32
    %c0_i32_0 = arith.constant 0 : i32
    %c0_i32_1 = arith.constant 0 : i32
    return %c0_i32, %c0_i32_0 : i32, i32
  }
  func.func @transform_10(%arg0: i32) -> (i32, i32) {
    %c0_i32 = arith.constant 0 : i32
    %c0_i32_0 = arith.constant 0 : i32
    %c0_i32_1 = arith.constant 0 : i32
    return %c0_i32, %c0_i32_0 : i32, i32
  }
  func.func @transform_11(%arg0: i32) -> (i32, i32) {
    %c0_i32 = arith.constant 0 : i32
    %c0_i32_0 = arith.constant 0 : i32
    %c0_i32_1 = arith.constant 0 : i32
    return %c0_i32, %c0_i32_0 : i32, i32
  }
  func.func @transform_12(%arg0: i32) -> (i32, i32) {
    %c0_i32 = arith.constant 0 : i32
    %c0_i32_0 = arith.constant 0 : i32
    %c0_i32_1 = arith.constant 0 : i32
    return %c0_i32, %c0_i32_0 : i32, i32
  }
  func.func @transform_13(%arg0: i32) -> (i32, i32) {
    %c0_i32 = arith.constant 0 : i32
    %c0_i32_0 = arith.constant 0 : i32
    %c0_i32_1 = arith.constant 0 : i32
    return %c0_i32, %c0_i32_0 : i32, i32
  }
  func.func @transform_14(%arg0: i32) -> (i32, i32) {
    %c0_i32 = arith.constant 0 : i32
    %c0_i32_0 = arith.constant 0 : i32
    %c0_i32_1 = arith.constant 0 : i32
    return %c0_i32, %c0_i32_0 : i32, i32
  }
  func.func @transform_15(%arg0: i32) -> (i32, i32) {
    %c0_i32 = arith.constant 0 : i32
    %c0_i32_0 = arith.constant 0 : i32
    %c0_i32_1 = arith.constant 0 : i32
    return %c0_i32, %c0_i32_0 : i32, i32
  }
  func.func @transform_16(%arg0: i32) -> (i32, i32) {
    %c0_i32 = arith.constant 0 : i32
    %c0_i32_0 = arith.constant 0 : i32
    return %arg0, %c0_i32 : i32, i32
  }
}

</mosaic_0001>

<bundles_post_ra>
// kernel: tpu_custom_call.1
= control target key start
LH: loop header
LB: loop body
LE: loop exit
PB: predicated region body
PF: predicated region fallthrough
CT: control target
= control target key end

     0   :  { %s5836_s0 = inlined_call_operand.hbm [shape: f32[16,32], index: 0, kind: input, shape index: {}]   ;;  %s5837_s1 = inlined_call_operand.hbm [shape: f32[2,4,8,8], index: 1, kind: input, shape index: {}]   ;;  %s5838_s2 = inlined_call_operand.hbm [shape: s8[2,8,8], index: 2, kind: input, shape index: {}]   ;;  %s5839_s3 = inlined_call_operand.hbm [shape: f32[8,8], index: 3, kind: input, shape index: {}]   ;;  %s5840_s4 = inlined_call_operand.hbm [shape: f32[8,8], index: 4, kind: input, shape index: {}]   ;;  %s5841_s5 = inlined_call_operand.hbm [shape: f32[8,8], index: 5, kind: input, shape index: {}]   ;;  %s5842_s6 = inlined_call_operand.hbm [shape: f32[32,32], index: 6, kind: input, shape index: {}]   ;;  %s5843_s7 = inlined_call_operand.hbm [shape: f32[1,32], index: 7, kind: input, shape index: {}]   ;;  %s5844_s8 = inlined_call_operand.hbm [shape: f32[1,32], index: 8, kind: input, shape index: {}]   ;;  %s5845_s9 = inlined_call_operand.hbm [shape: f32[1,32], index: 9, kind: input, shape index: {}]   ;;  %s5846_s10 = inlined_call_operand.hbm [shape: f32[32,128], index: 10, kind: input, shape index: {}]   ;;  %s5847_s11 = inlined_call_operand.hbm [shape: f32[1,128], index: 11, kind: input, shape index: {}]   ;;  %s5848_s12 = inlined_call_operand.hbm [shape: f32[128,32], index: 12, kind: input, shape index: {}]   ;;  %s5849_s13 = inlined_call_operand.hbm [shape: f32[1,32], index: 13, kind: input, shape index: {}]   ;;  %s5850_s14 = inlined_call_operand.hbm [shape: f32[1,32], index: 14, kind: input, shape index: {}]   ;;  %s5851_s15 = inlined_call_operand.hbm [shape: f32[1,32], index: 15, kind: input, shape index: {}]   ;;  %s5852_s16 = inlined_call_operand.hbm [shape: f32[16,32], index: 16, kind: output, shape index: {}]  }
   0x1   :  { %5854 = sst [smem:[#allocation40_spill]] %s5836_s0 }
   0x2   :  { %21 = vsyncpa [#allocation4], 0 }
   0x3   :  { %22 = vsyncpa [#allocation7], 0 }
   0x4   :  { %23 = vsyncpa [#allocation10], 0 }
   0x5   :  { %24 = vsyncpa [#allocation13], 0 }
   0x6   :  { %25 = vsyncpa [#allocation16], 0 }
   0x7   :  { %26 = vsyncpa [#allocation19], 0 }
   0x8   :  { %27 = vsyncpa [#allocation22], 0 }
   0x9   :  { %28 = vsyncpa [#allocation25], 0 }
   0xa   :  { %29 = vsyncpa [#allocation28], 0 }
   0xb   :  { %30 = vsyncpa [#allocation5], 0  ;;  %s5185_s21 = smov [#allocation6]   ;;  %s5186_s23 = smov [#allocation9]  }
   0xc   :  { %s48_s22 = sshll.u32 %s5185_s21, 4  ;;  %s73_s24 = sshll.u32 %s5186_s23, 4  ;;  %s49_s22 = int_to_ptr.vmem [resolvable:$true] %s48_s22  ;;  %s74_s24 = int_to_ptr.vmem [resolvable:$true] %s73_s24 }
   0xd   :  { %s4791_s27 = scalar_lea.hbm %s5837_s1, 1024 }
   0xe   :  { %p4792_p0 = scmp.ne.s32.totalorder %s5837_s1, %s4791_s27  ;;  %p4795_p1 = scmp.lt.u32.totalorder %s4791_s27, %s5837_s1 }
  0x10   :  { %p4797_p2 = pnand %p4795_p1, %p4792_p0 }
  0x12   :  { %4800 = shalt.err (!%p4797_p2)
}
  0x13   :  { %s4801_s17 = scalar_lea.vmem %s49_s22, 1024  ;;  %p4806_p4 = scmp.lt.s32.totalorder %s49_s22, %s49_s22 }
  0x14   :  { %p4802_p3 = scmp.ne.s32.totalorder %s49_s22, %s4801_s17  ;;  %p4807_p5 = scmp.lt.s32.totalorder %s4801_s17, %s4801_s17 }
  0x16   :  { %p4808_p6 = por %p4807_p5, %p4806_p4 }
  0x18   :  { %p4809_p7 = pnand %p4808_p6, %p4802_p3 }
  0x1a   :  { %4812 = shalt.err (!%p4809_p7)
}
  0x1b   :  { %s5187_s18 = smov 128   ;;  %s5188_s19 = smov 8  }
  0x1c   :  { %54 = dma.hbm_to_vmem [thread:$0]  %s5837_s1, 1024, %s49_s22, [#allocation7], %s5187_s18, %s5187_s18, %s5188_s19  }
  0x1d   :  { %s4813_s26 = scalar_lea.hbm %s5839_s3, 128 }
  0x1e   :  { %p4814_p8 = scmp.ne.s32.totalorder %s5839_s3, %s4813_s26  ;;  %p4817_p9 = scmp.lt.u32.totalorder %s4813_s26, %s5839_s3 }
  0x20   :  { %p4819_p10 = pnand %p4817_p9, %p4814_p8 }
  0x22   :  { %4822 = shalt.err (!%p4819_p10)
}
  0x23   :  { %s4823_s0 = scalar_lea.vmem %s74_s24, 128  ;;  %p4828_p12 = scmp.lt.s32.totalorder %s74_s24, %s74_s24 }
  0x24   :  { %p4824_p11 = scmp.ne.s32.totalorder %s74_s24, %s4823_s0  ;;  %p4829_p13 = scmp.lt.s32.totalorder %s4823_s0, %s4823_s0 }
  0x26   :  { %p4830_p0 = por %p4829_p13, %p4828_p12 }
  0x28   :  { %p4831_p1 = pnand %p4830_p0, %p4824_p11 }
  0x2a   :  { %4834 = shalt.err (!%p4831_p1)
}
  0x2b   :  { %76 = dma.hbm_to_vmem [thread:$0]  %s5839_s3, 128, %s74_s24, [#allocation10]  }
  0x2c   :  { %s5189_s17 = smov [#allocation12]   ;;  %s5190_s21 = smov [#allocation15]  }
  0x2d   :  { %s93_s20 = sshll.u32 %s5189_s17, 4  ;;  %s115_s23 = sshll.u32 %s5190_s21, 4  ;;  %s94_s20 = int_to_ptr.vmem [resolvable:$true] %s93_s20  ;;  %s116_s23 = int_to_ptr.vmem [resolvable:$true] %s115_s23 }
  0x2e   :  { %s4835_s27 = scalar_lea.hbm %s5841_s5, 128 }
  0x2f   :  { %p4836_p2 = scmp.ne.s32.totalorder %s5841_s5, %s4835_s27  ;;  %p4839_p3 = scmp.lt.u32.totalorder %s4835_s27, %s5841_s5 }
  0x31   :  { %p4841_p4 = pnand %p4839_p3, %p4836_p2 }
  0x33   :  { %4844 = shalt.err (!%p4841_p4)
}
  0x34   :  { %s4845_s3 = scalar_lea.vmem %s94_s20, 128  ;;  %p4850_p6 = scmp.lt.s32.totalorder %s94_s20, %s94_s20 }
  0x35   :  { %p4846_p5 = scmp.ne.s32.totalorder %s94_s20, %s4845_s3  ;;  %p4851_p7 = scmp.lt.s32.totalorder %s4845_s3, %s4845_s3 }
  0x37   :  { %p4852_p8 = por %p4851_p7, %p4850_p6 }
  0x39   :  { %p4853_p9 = pnand %p4852_p8, %p4846_p5 }
  0x3b   :  { %4856 = shalt.err (!%p4853_p9)
}
  0x3c   :  { %96 = dma.hbm_to_vmem [thread:$0]  %s5841_s5, 128, %s94_s20, [#allocation13]  }
  0x3d   :  { %s4857_s21 = scalar_lea.hbm %s5843_s7, 16 }
  0x3e   :  { %p4858_p10 = scmp.ne.s32.totalorder %s5843_s7, %s4857_s21  ;;  %p4861_p11 = scmp.lt.u32.totalorder %s4857_s21, %s5843_s7 }
  0x40   :  { %p4863_p12 = pnand %p4861_p11, %p4858_p10 }
  0x42   :  { %4866 = shalt.err (!%p4863_p12)
}
  0x43   :  { %s4867_s29 = scalar_lea.vmem %s116_s23, 16  ;;  %s4871_s30 = scalar_lea.vmem %s116_s23, 32 }
  0x44   :  { %p4868_p13 = scmp.ne.s32.totalorder %s116_s23, %s4867_s29  ;;  %p4872_p0 = scmp.lt.s32.totalorder %s116_s23, %s116_s23 }
  0x45   :  { %p4873_p1 = scmp.lt.s32.totalorder %s4871_s30, %s4867_s29 }
  0x47   :  { %p4874_p2 = por %p4873_p1, %p4872_p0 }
  0x49   :  { %p4875_p3 = pnand %p4874_p2, %p4868_p13 }
  0x4b   :  { %4878 = shalt.err (!%p4875_p3)
}
  0x4c   :  { %118 = dma.hbm_to_vmem [thread:$0]  %s5843_s7, 16, %s116_s23, [#allocation16]  }
  0x4d   :  { %s5191_s0 = smov [#allocation18]   ;;  %s5192_s24 = smov [#allocation21]  }
  0x4e   :  { %s135_s3 = sshll.u32 %s5191_s0, 4  ;;  %s157_s1 = sshll.u32 %s5192_s24, 4  ;;  %s136_s3 = int_to_ptr.vmem [resolvable:$true] %s135_s3  ;;  %s158_s1 = int_to_ptr.vmem [resolvable:$true] %s157_s1 }
  0x4f   :  { %s4879_s21 = scalar_lea.hbm %s5845_s9, 16 }
  0x50   :  { %p4880_p4 = scmp.ne.s32.totalorder %s5845_s9, %s4879_s21  ;;  %p4883_p5 = scmp.lt.u32.totalorder %s4879_s21, %s5845_s9 }
  0x52   :  { %p4885_p6 = pnand %p4883_p5, %p4880_p4 }
  0x54   :  { %4888 = shalt.err (!%p4885_p6)
}
  0x55   :  { %s4889_s7 = scalar_lea.vmem %s136_s3, 16  ;;  %s4893_s23 = scalar_lea.vmem %s136_s3, 32 }
  0x56   :  { %p4890_p7 = scmp.ne.s32.totalorder %s136_s3, %s4889_s7  ;;  %p4894_p8 = scmp.lt.s32.totalorder %s136_s3, %s136_s3 }
  0x57   :  { %p4895_p9 = scmp.lt.s32.totalorder %s4893_s23, %s4889_s7 }
  0x59   :  { %p4896_p10 = por %p4895_p9, %p4894_p8 }
  0x5b   :  { %p4897_p11 = pnand %p4896_p10, %p4890_p7 }
  0x5d   :  { %4900 = shalt.err (!%p4897_p11)
}
  0x5e   :  { %138 = dma.hbm_to_vmem [thread:$0]  %s5845_s9, 16, %s136_s3, [#allocation19]  }
  0x5f   :  { %s4901_s0 = scalar_lea.hbm %s5847_s11, 16 }
  0x60   :  { %p4902_p12 = scmp.ne.s32.totalorder %s5847_s11, %s4901_s0  ;;  %p4905_p13 = scmp.lt.u32.totalorder %s4901_s0, %s5847_s11 }
  0x62   :  { %p4907_p0 = pnand %p4905_p13, %p4902_p12 }
  0x64   :  { %4910 = shalt.err (!%p4907_p0)
}
  0x65   :  { %s4911_s25 = scalar_lea.vmem %s158_s1, 16  ;;  %s4915_s26 = scalar_lea.vmem %s158_s1, 32 }
  0x66   :  { %p4912_p1 = scmp.ne.s32.totalorder %s158_s1, %s4911_s25  ;;  %p4916_p2 = scmp.lt.s32.totalorder %s158_s1, %s158_s1 }
  0x67   :  { %p4917_p3 = scmp.lt.s32.totalorder %s4915_s26, %s4911_s25 }
  0x69   :  { %p4918_p4 = por %p4917_p3, %p4916_p2 }
  0x6b   :  { %p4919_p5 = pnand %p4918_p4, %p4912_p1 }
  0x6d   :  { %4922 = shalt.err (!%p4919_p5)
}
  0x6e   :  { %160 = dma.hbm_to_vmem [thread:$0]  %s5847_s11, 16, %s158_s1, [#allocation22]  }
  0x6f   :  { %s5193_s27 = smov [#allocation24]   ;;  %s5194_s7 = smov [#allocation3]  }
  0x70   :  { %s179_s28 = sshll.u32 %s5193_s27, 4  ;;  %s36_s23 = sshll.u32 %s5194_s7, 4  ;;  %s180_s28 = int_to_ptr.vmem [resolvable:$true] %s179_s28  ;;  %s5368_s23 = int_to_ptr.vmem [resolvable:$true] %s36_s23 }
  0x71   :  { %s4923_s5 = scalar_lea.hbm %s5849_s13, 16 }
  0x72   :  { %p4924_p6 = scmp.ne.s32.totalorder %s5849_s13, %s4923_s5  ;;  %p4927_p7 = scmp.lt.u32.totalorder %s4923_s5, %s5849_s13 }
  0x74   :  { %p4929_p8 = pnand %p4927_p7, %p4924_p6 }
  0x76   :  { %4932 = shalt.err (!%p4929_p8)
}
  0x77   :  { %s4933_s11 = scalar_lea.vmem %s180_s28, 16  ;;  %s4937_s1 = scalar_lea.vmem %s180_s28, 32 }
  0x78   :  { %p4934_p9 = scmp.ne.s32.totalorder %s180_s28, %s4933_s11  ;;  %p4938_p10 = scmp.lt.s32.totalorder %s180_s28, %s180_s28 }
  0x79   :  { %p4939_p11 = scmp.lt.s32.totalorder %s4937_s1, %s4933_s11 }
  0x7b   :  { %p4940_p12 = por %p4939_p11, %p4938_p10 }
  0x7d   :  { %p4941_p13 = pnand %p4940_p12, %p4934_p9 }
  0x7f   :  { %4944 = shalt.err (!%p4941_p13)
}
  0x80   :  { %182 = dma.hbm_to_vmem [thread:$0]  %s5849_s13, 16, %s180_s28, [#allocation25]  }
  0x81   :  { %s5855_s9 = sld [smem:[#allocation40_spill]] }
  0x87   :  { %s4945_s3 = scalar_lea.hbm %s5855_s9, 256 }
  0x88   :  { %p4946_p0 = scmp.ne.s32.totalorder %s5855_s9, %s4945_s3  ;;  %p4949_p1 = scmp.lt.u32.totalorder %s4945_s3, %s5855_s9 }
  0x8a   :  { %p4951_p2 = pnand %p4949_p1, %p4946_p0 }
  0x8c   :  { %4954 = shalt.err (!%p4951_p2)
}
  0x8d   :  { %s4955_s5 = scalar_lea.vmem %s5368_s23, 256  ;;  %p4960_p4 = scmp.lt.s32.totalorder %s5368_s23, %s5368_s23 }
  0x8e   :  { %p4956_p3 = scmp.ne.s32.totalorder %s5368_s23, %s4955_s5  ;;  %p4961_p5 = scmp.lt.s32.totalorder %s4955_s5, %s4955_s5 }
  0x90   :  { %p4962_p6 = por %p4961_p5, %p4960_p4 }
  0x92   :  { %p4963_p7 = pnand %p4962_p6, %p4956_p3 }
  0x94   :  { %4966 = shalt.err (!%p4963_p7)
}
  0x95   :  { %42 = dma.hbm_to_vmem [thread:$0]  %s5855_s9, 256, %s5368_s23, [#allocation4], %s5187_s18, %s5187_s18, %s5188_s19  }
  0x96   :  { %s5195_s20 = smov [#allocation8]   ;;  %s4967_s11 = scalar_lea.hbm %s5838_s2, 64 }
  0x97   :  { %s60_s0 = sshll.u32 %s5195_s20, 4  ;;  %p4968_p8 = scmp.ne.s32.totalorder %s5838_s2, %s4967_s11  ;;  %s61_s0 = int_to_ptr.vmem [resolvable:$true] %s60_s0 }
  0x98   :  { %p4971_p9 = scmp.lt.u32.totalorder %s4967_s11, %s5838_s2 }
  0x9a   :  { %p4973_p10 = pnand %p4971_p9, %p4968_p8 }
  0x9c   :  { %4976 = shalt.err (!%p4973_p10)
}
  0x9d   :  { %s4977_s26 = scalar_lea.vmem %s61_s0, 64  ;;  %p4982_p12 = scmp.lt.s32.totalorder %s61_s0, %s61_s0 }
  0x9e   :  { %p4978_p11 = scmp.ne.s32.totalorder %s61_s0, %s4977_s26  ;;  %p4983_p13 = scmp.lt.s32.totalorder %s4977_s26, %s4977_s26 }
  0xa0   :  { %p4984_p0 = por %p4983_p13, %p4982_p12 }
  0xa2   :  { %p4985_p1 = pnand %p4984_p0, %p4978_p11 }
  0xa4   :  { %4988 = shalt.err (!%p4985_p1)
}
  0xa5   :  { %s5196_s23 = smov 32   ;;  %s5197_s9 = smov 2  }
  0xa6   :  { %66 = dma.hbm_to_vmem [thread:$0]  %s5838_s2, 64, %s61_s0, [#allocation7], %s5196_s23, %s5196_s23, %s5197_s9  }
  0xa7   :  { %s5198_s7 = smov [#allocation11]   ;;  %s5199_s30 = smov [#allocation14]  }
  0xa8   :  { %s83_s29 = sshll.u32 %s5198_s7, 4  ;;  %s102_s5 = sshll.u32 %s5199_s30, 4  ;;  %s84_s29 = int_to_ptr.vmem [resolvable:$true] %s83_s29  ;;  %s103_s5 = int_to_ptr.vmem [resolvable:$true] %s102_s5 }
  0xa9   :  { %s4989_s20 = scalar_lea.hbm %s5840_s4, 128 }
  0xaa   :  { %p4990_p2 = scmp.ne.s32.totalorder %s5840_s4, %s4989_s20  ;;  %p4993_p3 = scmp.lt.u32.totalorder %s4989_s20, %s5840_s4 }
  0xac   :  { %p4995_p4 = pnand %p4993_p3, %p4990_p2 }
  0xae   :  { %4998 = shalt.err (!%p4995_p4)
}
  0xaf   :  { %s4999_s2 = scalar_lea.vmem %s84_s29, 128  ;;  %p5004_p6 = scmp.lt.s32.totalorder %s84_s29, %s84_s29 }
  0xb0   :  { %p5000_p5 = scmp.ne.s32.totalorder %s84_s29, %s4999_s2  ;;  %p5005_p7 = scmp.lt.s32.totalorder %s4999_s2, %s4999_s2 }
  0xb2   :  { %p5006_p8 = por %p5005_p7, %p5004_p6 }
  0xb4   :  { %p5007_p9 = pnand %p5006_p8, %p5000_p5 }
  0xb6   :  { %5010 = shalt.err (!%p5007_p9)
}
  0xb7   :  { %86 = dma.hbm_to_vmem [thread:$0]  %s5840_s4, 128, %s84_s29, [#allocation10]  }
  0xb8   :  { %s5011_s26 = scalar_lea.hbm %s5842_s6, 512 }
  0xb9   :  { %p5012_p10 = scmp.ne.s32.totalorder %s5842_s6, %s5011_s26  ;;  %p5015_p11 = scmp.lt.u32.totalorder %s5011_s26, %s5842_s6 }
  0xbb   :  { %p5017_p12 = pnand %p5015_p11, %p5012_p10 }
  0xbd   :  { %5020 = shalt.err (!%p5017_p12)
}
  0xbe   :  { %s5021_s7 = scalar_lea.vmem %s103_s5, 512  ;;  %p5026_p0 = scmp.lt.s32.totalorder %s103_s5, %s103_s5 }
  0xbf   :  { %p5022_p13 = scmp.ne.s32.totalorder %s103_s5, %s5021_s7  ;;  %p5027_p1 = scmp.lt.s32.totalorder %s5021_s7, %s5021_s7 }
  0xc1   :  { %p5028_p2 = por %p5027_p1, %p5026_p0 }
  0xc3   :  { %p5029_p3 = pnand %p5028_p2, %p5022_p13 }
  0xc5   :  { %5032 = shalt.err (!%p5029_p3)
}
  0xc6   :  { %108 = dma.hbm_to_vmem [thread:$0]  %s5842_s6, 512, %s103_s5, [#allocation13], %s5187_s18, %s5187_s18, %s5188_s19  }
  0xc7   :  { %s5200_s30 = smov [#allocation17]   ;;  %s5201_s28 = smov [#allocation20]  }
  0xc8   :  { %s125_s13 = sshll.u32 %s5200_s30, 4  ;;  %s144_s20 = sshll.u32 %s5201_s28, 4  ;;  %s126_s13 = int_to_ptr.vmem [resolvable:$true] %s125_s13  ;;  %s145_s20 = int_to_ptr.vmem [resolvable:$true] %s144_s20 }
  0xc9   :  { %s5033_s11 = scalar_lea.hbm %s5844_s8, 16 }
  0xca   :  { %p5034_p4 = scmp.ne.s32.totalorder %s5844_s8, %s5033_s11  ;;  %p5037_p5 = scmp.lt.u32.totalorder %s5033_s11, %s5844_s8 }
  0xcc   :  { %p5039_p6 = pnand %p5037_p5, %p5034_p4 }
  0xce   :  { %5042 = shalt.err (!%p5039_p6)
}
  0xcf   :  { %s5043_s6 = scalar_lea.vmem %s126_s13, 16  ;;  %s5047_s5 = scalar_lea.vmem %s126_s13, 32 }
  0xd0   :  { %p5044_p7 = scmp.ne.s32.totalorder %s126_s13, %s5043_s6  ;;  %p5048_p8 = scmp.lt.s32.totalorder %s126_s13, %s126_s13 }
  0xd1   :  { %p5049_p9 = scmp.lt.s32.totalorder %s5047_s5, %s5043_s6 }
  0xd3   :  { %p5050_p10 = por %p5049_p9, %p5048_p8 }
  0xd5   :  { %p5051_p11 = pnand %p5050_p10, %p5044_p7 }
  0xd7   :  { %5054 = shalt.err (!%p5051_p11)
}
  0xd8   :  { %128 = dma.hbm_to_vmem [thread:$0]  %s5844_s8, 16, %s126_s13, [#allocation16]  }
  0xd9   :  { %s5055_s9 = scalar_lea.hbm %s5846_s10, 512 }
  0xda   :  { %p5056_p12 = scmp.ne.s32.totalorder %s5846_s10, %s5055_s9  ;;  %p5059_p13 = scmp.lt.u32.totalorder %s5055_s9, %s5846_s10 }
  0xdc   :  { %p5061_p0 = pnand %p5059_p13, %p5056_p12 }
  0xde   :  { %5064 = shalt.err (!%p5061_p0)
}
  0xdf   :  { %s5065_s29 = scalar_lea.vmem %s145_s20, 512  ;;  %p5070_p2 = scmp.lt.s32.totalorder %s145_s20, %s145_s20 }
  0xe0   :  { %p5066_p1 = scmp.ne.s32.totalorder %s145_s20, %s5065_s29  ;;  %p5071_p3 = scmp.lt.s32.totalorder %s5065_s29, %s5065_s29 }
  0xe2   :  { %p5072_p4 = por %p5071_p3, %p5070_p2 }
  0xe4   :  { %p5073_p5 = pnand %p5072_p4, %p5066_p1 }
  0xe6   :  { %5076 = shalt.err (!%p5073_p5)
}
  0xe7   :  { %150 = dma.hbm_to_vmem [thread:$0]  %s5846_s10, 512, %s145_s20, [#allocation19], %s5187_s18, %s5187_s18, %s5188_s19  }
  0xe8   :  { %s5202_s13 = smov [#allocation23]   ;;  %s5203_s24 = smov [#allocation26]  }
  0xe9   :  { %s166_s28 = sshll.u32 %s5202_s13, 4  ;;  %s189_s22 = sshll.u32 %s5203_s24, 4  ;;  %s167_s28 = int_to_ptr.vmem [resolvable:$true] %s166_s28  ;;  %s190_s22 = int_to_ptr.vmem [resolvable:$true] %s189_s22 }
  0xea   :  { %s5077_s2 = scalar_lea.hbm %s5848_s12, 2048 }
  0xeb   :  { %p5078_p6 = scmp.ne.s32.totalorder %s5848_s12, %s5077_s2  ;;  %p5081_p7 = scmp.lt.u32.totalorder %s5077_s2, %s5848_s12 }
  0xed   :  { %p5083_p8 = pnand %p5081_p7, %p5078_p6 }
  0xef   :  { %5086 = shalt.err (!%p5083_p8)
}
  0xf0   :  { %s5087_s10 = scalar_lea.vmem %s167_s28, 2048  ;;  %p5092_p10 = scmp.lt.s32.totalorder %s167_s28, %s167_s28 }
  0xf1   :  { %p5088_p9 = scmp.ne.s32.totalorder %s167_s28, %s5087_s10  ;;  %p5093_p11 = scmp.lt.s32.totalorder %s5087_s10, %s5087_s10 }
  0xf3   :  { %p5094_p12 = por %p5093_p11, %p5092_p10 }
  0xf5   :  { %p5095_p13 = pnand %p5094_p12, %p5088_p9 }
  0xf7   :  { %5098 = shalt.err (!%p5095_p13)
}
  0xf8   :  { %172 = dma.hbm_to_vmem [thread:$0]  %s5848_s12, 2048, %s167_s28, [#allocation22], %s5187_s18, %s5187_s18, %s5188_s19  }
  0xf9   :  { %s5099_s23 = scalar_lea.hbm %s5850_s14, 16 }
  0xfa   :  { %p5100_p0 = scmp.ne.s32.totalorder %s5850_s14, %s5099_s23  ;;  %p5103_p1 = scmp.lt.u32.totalorder %s5099_s23, %s5850_s14 }
  0xfc   :  { %p5105_p2 = pnand %p5103_p1, %p5100_p0 }
  0xfe   :  { %5108 = shalt.err (!%p5105_p2)
}
  0xff   :  { %s5109_s4 = scalar_lea.vmem %s190_s22, 16  ;;  %s5113_s29 = scalar_lea.vmem %s190_s22, 32 }
 0x100   :  { %p5110_p3 = scmp.ne.s32.totalorder %s190_s22, %s5109_s4  ;;  %p5114_p4 = scmp.lt.s32.totalorder %s190_s22, %s190_s22 }
 0x101   :  { %p5115_p5 = scmp.lt.s32.totalorder %s5113_s29, %s5109_s4 }
 0x103   :  { %p5116_p6 = por %p5115_p5, %p5114_p4 }
 0x105   :  { %p5117_p7 = pnand %p5116_p6, %p5110_p3 }
 0x107   :  { %5120 = shalt.err (!%p5117_p7)
}
 0x108   :  { %192 = dma.hbm_to_vmem [thread:$0]  %s5850_s14, 16, %s190_s22, [#allocation25]  }
 0x109   :  { %s5204_s30 = smov [#allocation27]   ;;  %s5121_s11 = scalar_lea.hbm %s5851_s15, 16 }
 0x10a   :  { %s199_s13 = sshll.u32 %s5204_s30, 4  ;;  %p5122_p8 = scmp.ne.s32.totalorder %s5851_s15, %s5121_s11  ;;  %s200_s13 = int_to_ptr.vmem [resolvable:$true] %s199_s13 }
 0x10b   :  { %p5125_p9 = scmp.lt.u32.totalorder %s5121_s11, %s5851_s15 }
 0x10d   :  { %p5127_p10 = pnand %p5125_p9, %p5122_p8 }
 0x10f   :  { %5130 = shalt.err (!%p5127_p10)
}
 0x110   :  { %s5131_s6 = scalar_lea.vmem %s200_s13, 16  ;;  %s5135_s14 = scalar_lea.vmem %s200_s13, 32 }
 0x111   :  { %p5132_p11 = scmp.ne.s32.totalorder %s200_s13, %s5131_s6  ;;  %p5136_p12 = scmp.lt.s32.totalorder %s200_s13, %s200_s13 }
 0x112   :  { %p5137_p13 = scmp.lt.s32.totalorder %s5135_s14, %s5131_s6 }
 0x114   :  { %p5138_p0 = por %p5137_p13, %p5136_p12 }
 0x116   :  { %p5139_p1 = pnand %p5138_p0, %p5132_p11 }
 0x118   :  { %5142 = shalt.err (!%p5139_p1)
}
 0x119   :  { %202 = dma.hbm_to_vmem [thread:$0]  %s5851_s15, 16, %s200_s13, [#allocation28]  }
 0x11a   :  { %5165 = dma.done.wait [#allocation4], 256  }
 0x11b   :  { %5166 = vsyncadd [#allocation4], 4294967040 }
 0x11c   :  { %5167 = dma.done.wait [#allocation7], 1088  }
 0x11d   :  { %5168 = vsyncadd [#allocation7], 4294966208 }
 0x11e   :  { %5169 = dma.done.wait [#allocation10], 256  }
 0x11f   :  { %5170 = vsyncadd [#allocation10], 4294967040 }
 0x120   :  { %5171 = dma.done.wait [#allocation13], 640  }
 0x121   :  { %5172 = vsyncadd [#allocation13], 4294966656 }
 0x122   :  { %5173 = dma.done.wait [#allocation16], 32  }
 0x123   :  { %5174 = vsyncadd [#allocation16], 4294967264 }
 0x124   :  { %5175 = dma.done.wait [#allocation19], 528  }
 0x125   :  { %5176 = vsyncadd [#allocation19], 4294966768 }
 0x126   :  { %5177 = dma.done.wait [#allocation22], 2064  }
 0x127   :  { %5178 = vsyncadd [#allocation22], 4294965232 }
 0x128   :  { %5179 = dma.done.wait [#allocation25], 32  }
 0x129   :  { %5180 = vsyncadd [#allocation25], 4294967264 }
 0x12a   :  { %5181 = dma.done.wait [#allocation28], 16  }
 0x12b   :  { %5182 = vsyncadd [#allocation28], 4294967280  ;;  %v5205_v0 = vmov 0.0   ;;  %vm5206_vm0 = vmmov 0   ;;  %vm263_vm1 = vcmask 64512   ;;  %v5513_v1 = vld [vmem:[#allocation9] sm:$0xff] }
 0x12c   :  { %4402 = vmatprep.subr.mxu0 %v5205_v0  ;;  %4404 = vmatprep.mubr.msk.f32.mxu0 %vm5206_vm0, %v5205_v0  ;;  %v262_v2 = vld [vmem:[#allocation6] sm:$0xff]  ;;  %v5515_v3 = vld [vmem:[#allocation11] sm:$0xff]  ;;  %v5525_v4 = vld [vmem:[#allocation12] sm:$0xff]  ;;  %vm251_vm2 = vcmask 261120   ;;  %s5207_s15 = smov [#allocation29]  }
 0x12d   :  { %4437 = vmatprep.subr.mxu1 %v5205_v0  ;;  %4439 = vmatprep.mubr.msk.f32.mxu1 %vm5206_vm0, %v5205_v0  ;;  %v5542_v12 = vld [vmem:[#allocation8] sm:$0xf]   ;;  %v716_v30 = vld [vmem:[#allocation6 + $0x8] sm:$0xff]  ;;  %252 = vst.msk [vmem:[#allocation2] sm:$0xff] %vm251_vm2, %v5205_v0  ;;  %253 = vst.msk [vmem:[#allocation2 + $0x8] sm:$0xff] %vm251_vm2, %v5205_v0  ;;  %s4197_s10 = sshll.u32 %s5207_s15, 4  ;;  %s4198_s10 = int_to_ptr.vmem [resolvable:$true] %s4197_s10 }
 0x12e   :  { %4403 = vmatpush3.msra.mxu0 %v5513_v1  ;;  %4438 = vmatpush3.msra.mxu1 %v5515_v3  ;;  %v258_v13 = vunpack.c.0.s8 %v5542_v12  ;;  %v5550_v29 = vld [vmem:[#allocation14] sm:$0xff]  ;;  %v5587_v53 = vld [vmem:[#allocation14 + $0x8] sm:$0xff]  ;;  %v1169_v57 = vld [vmem:[#allocation6 + $0x10] sm:$0xff]  ;;  %s5143_s20 = scalar_lea.vmem %s4198_s10, 256  ;;  %p5148_p3 = scmp.lt.s32.totalorder %s4198_s10, %s4198_s10 }
 0x12f   :  { %4405 = vmatmul.mubr.msk.f32.vlgmr.msra.gmra.mrb[0].mxu0 %vm263_vm1, %v262_v2  ;;  %4407 = vmatprep.subr.mxu0 %v5205_v0  ;;  %p5144_p2 = scmp.ne.s32.totalorder %s4198_s10, %s5143_s20  ;;  %p5149_p4 = scmp.lt.s32.totalorder %s5143_s20, %s5143_s20 }
 0x130   :  { %4408 = vmatpush3.msra.mxu0 %v5515_v3  ;;  %4409 = vmatprep.mubr.msk.f32.mxu0 %vm5206_vm0, %v5205_v0  ;;  %v259_v14 = vcvt.s32.f32 %v258_v13 }
 0x131   :  { %4412 = vmatprep.subr.mxu0 %v5205_v0  ;;  %4447 = vmatprep.subr.mxu1 %v5205_v0  ;;  %p5150_p5 = por %p5149_p4, %p5148_p3 }
 0x132   :  { %v260_v15 = vsub.f32 1.0, %v259_v14  ;;  %4440 = vmatmul.mubr.msk.f32.vlgmr.msra.gmra.mrb[0].mxu1 %vm263_vm1, %v716_v30 }
 0x133   :  { %4410 = vmatmul.mubr.msk.f32.vlgmr.msra.gmra.mrb[2].mxu0 %vm263_vm1, %v262_v2  ;;  %4449 = vmatprep.mubr.msk.f32.mxu1 %vm5206_vm0, %v5205_v0  ;;  %p5151_p6 = pnand %p5150_p5, %p5144_p2 }
 0x134   :  { %4413 = vmatpush3.msra.mxu0 %v5525_v4  ;;  %4414 = vmatprep.mubr.msk.f32.mxu0 %vm5206_vm0, %v5205_v0  ;;  %v5545_v16 = vmul.f32 -1.767767e+19, %v260_v15  ;;  %v639_v35 = vld [vmem:[#allocation2] sm:$0xff] }
 0x135   :  { %4417 = vmatprep.subr.mxu0 %v5205_v0 }
 0x137   :  { %4415 = vmatmul.mubr.msk.f32.vlgmr.msra.gmra.mrb[4].mxu0 %vm263_vm1, %v262_v2 }
 0x138   :  { %4419 = vmatprep.mubr.msk.f32.mxu0 %vm5206_vm0, %v5205_v0 }
 0x202   :  { %v333_v5 = vpop.f32.mrb[0].mxu0 }
 0x203   :  { %v4406_v6 = vpop.f32.mrb[1].mxu0  ;;  %v337_v9 = vmul.f32 0.17677669, %v333_v5 }
 0x205   :  { %v857_v33 = vpop.f32.mrb[0].mxu1 }
 0x206   :  { %v404_v7 = vpop.f32.mrb[2].mxu0  ;;  %v4441_v34 = vpop.f32.mrb[1].mxu1  ;;  %4448 = vmatpush3.xpose.msk.msra.mxu1 %vm263_vm1, %v857_v33 }
 0x207   :  { %v4411_v8 = vpop.f32.mrb[3].mxu0  ;;  %4418 = vmatpush3.xpose.msk.msra.mxu0 %vm263_vm1, %v404_v7  ;;  %4457 = vmatprep.subr.mxu1 %v5205_v0 }
 0x208   :  { %4422 = vmatprep.subr.mxu0 %v5205_v0 }
 0x20a   :  { %4420 = vmatmul.mubr.msk.f32.vlgmr.msra.gmra.mrb[6].mxu0 %vm263_vm1, %v337_v9  ;;  %v474_v10 = vpop.f32.mrb[4].mxu0 }
 0x20b   :  { %v4416_v11 = vpop.f32.mrb[5].mxu0  ;;  %4423 = vmatpush3.msra.mxu0 %v474_v10  ;;  %4424 = vmatprep.mubr.msk.f32.mxu0 %vm5206_vm0, %v5205_v0 }
 0x20c   :  { %4427 = vmatprep.subr.mxu0 %v5205_v0 }
 0x2dd   :  { %v550_v17 = vpop.f32.mrb[6].mxu0 }
 0x2de   :  { %v551_v18 = vadd.f32 %v550_v17, %v5545_v16  ;;  %v4421_v19 = vpop.f32.mrb[7].mxu0 }
 0x2e0   :  { %v554_v20 = vsel %vm263_vm1, %v551_v18, -inf }
 0x2e1   :  { %555 = vmax.xlane.f32.xlu0 %v554_v20 }
 0x36e   :  { %v556_v21 = vpop.xlane.xlu0 %555 }
 0x36f   :  { %v557_v22 = vsub.f32 %v551_v18, %v556_v21 }
 0x371   :  { %v558_v23 = vmul.f32 1.442695, %v557_v22  ;;  %v5622_v22 = vld [vmem:[#allocation14 + $0x10] sm:$0xff] }
 0x373   :  { %4751 = vpow2.f32 %v558_v23 }
 0x37d   :  { %v4752_v24 = vpop.eup %4751 }
 0x37e   :  { %v560_v25 = vsel %vm263_vm1, %v4752_v24, 0.0 }
 0x37f   :  { %561 = vadd.xlane.f32.xlu0 %v560_v25 }
 0x40c   :  { %v562_v26 = vpop.xlane.xlu0 %561 }
 0x40d   :  { %4753 = vrcp.f32 %v562_v26  ;;  %v1622_v26 = vld [vmem:[#allocation6 + $0x18] sm:$0xff] }
 0x417   :  { %v4754_v27 = vpop.eup %4753 }
 0x418   :  { %v564_v28 = vmul.f32 %v4754_v27, %v4752_v24 }
 0x41a   :  { %4425 = vmatmul.mubr.msk.f32.vlgmr.msra.gmra.mrb[8].mxu0 %vm263_vm1, %v564_v28 }
 0x41b   :  { %4428 = vmatpush3.msra.mxu0 %v5550_v29  ;;  %4429 = vmatprep.mubr.msk.f32.mxu0 %vm5206_vm0, %v5205_v0 }
 0x41c   :  { %4432 = vmatprep.subr.mxu0 %v5205_v0 }
 0x4ed   :  { %v634_v31 = vpop.f32.mrb[8].mxu0 }
 0x4ee   :  { %v4426_v32 = vpop.f32.mrb[9].mxu0  ;;  %4430 = vmatmul.mubr.msk.f32.vlgmr.msra.gmra.mrb[10].mxu0 %vm263_vm1, %v634_v31 }
 0x4ef   :  { %4433 = vmatpush3.msra.mxu0 %v5513_v1  ;;  %4434 = vmatprep.mubr.msk.f32.mxu0 %vm5206_vm0, %v5205_v0 }
 0x4f0   :  { %4442 = vmatprep.subr.mxu0 %v5205_v0 }
 0x4f2   :  { %4435 = vmatmul.mubr.msk.f32.vlgmr.msra.gmra.mrb[12].mxu0 %vm263_vm1, %v716_v30 }
 0x4f3   :  { %4443 = vmatpush3.msra.mxu0 %v5525_v4  ;;  %4444 = vmatprep.mubr.msk.f32.mxu0 %vm5206_vm0, %v5205_v0 }
 0x4f4   :  { %4452 = vmatprep.subr.mxu0 %v5205_v0 }
 0x4f6   :  { %4445 = vmatmul.mubr.msk.f32.vlgmr.msra.gmra.mrb[14].mxu0 %vm263_vm1, %v716_v30 }
 0x4f7   :  { %4454 = vmatprep.mubr.msk.f32.mxu0 %vm5206_vm0, %v5205_v0 }
 0x5c1   :  { %v709_v36 = vpop.f32.mrb[10].mxu0 }
 0x5c2   :  { %v713_v37 = vadd.f32 %v709_v36, %v639_v35  ;;  %v4431_v38 = vpop.f32.mrb[11].mxu0 }
 0x5c4   :  { %714 = vst.msk [vmem:[#allocation2] sm:$0xff] %vm251_vm2, %v713_v37 }
 0x5c5   :  { %v786_v39 = vpop.f32.mrb[12].mxu0 }
 0x5c6   :  { %v790_v40 = vmul.f32 0.17677669, %v786_v39  ;;  %v4436_v41 = vpop.f32.mrb[13].mxu0 }
 0x5c8   :  { %4450 = vmatmul.mubr.msk.f32.vlgmr.msra.gmra.mrb[2].mxu1 %vm263_vm1, %v790_v40 }
 0x5c9   :  { %4459 = vmatprep.mubr.msk.f32.mxu1 %vm5206_vm0, %v5205_v0  ;;  %v927_v51 = vpop.f32.mrb[14].mxu0  ;;  %4458 = vmatpush3.msra.mxu1 %v5587_v53 }
 0x5ca   :  { %v4446_v52 = vpop.f32.mrb[15].mxu0  ;;  %4453 = vmatpush3.msra.mxu0 %v927_v51  ;;  %4467 = vmatprep.subr.mxu1 %v5205_v0 }
 0x5cb   :  { %4462 = vmatprep.subr.mxu0 %v5205_v0  ;;  %v1092_v62 = vld [vmem:[#allocation2] sm:$0xff] }
 0x69b   :  { %v1003_v42 = vpop.f32.mrb[2].mxu1 }
 0x69c   :  { %v1004_v43 = vadd.f32 %v1003_v42, %v5545_v16  ;;  %v4451_v44 = vpop.f32.mrb[3].mxu1 }
 0x69e   :  { %v1007_v45 = vsel %vm263_vm1, %v1004_v43, -inf }
 0x69f   :  { %1008 = vmax.xlane.f32.xlu1 %v1007_v45 }
 0x72c   :  { %v1009_v46 = vpop.xlane.xlu1 %1008 }
 0x72d   :  { %v1010_v47 = vsub.f32 %v1004_v43, %v1009_v46 }
 0x72f   :  { %v1011_v48 = vmul.f32 1.442695, %v1010_v47 }
 0x731   :  { %4755 = vpow2.f32 %v1011_v48 }
 0x73b   :  { %v4756_v49 = vpop.eup %4755 }
 0x73c   :  { %v1013_v50 = vsel %vm263_vm1, %v4756_v49, 0.0 }
 0x73d   :  { %1014 = vadd.xlane.f32.xlu1 %v1013_v50  ;;  %v5657_v50 = vld [vmem:[#allocation14 + $0x18] sm:$0xff] }
 0x7ca   :  { %v1015_v54 = vpop.xlane.xlu1 %1014 }
 0x7cb   :  { %4757 = vrcp.f32 %v1015_v54  ;;  %v2081_v54 = vld [vmem:[#allocation6 + $0x20] sm:$0xff] }
 0x7d5   :  { %v4758_v55 = vpop.eup %4757 }
 0x7d6   :  { %v1017_v56 = vmul.f32 %v4758_v55, %v4756_v49 }
 0x7d8   :  { %4455 = vmatmul.mubr.msk.f32.vlgmr.msra.gmra.mrb[16].mxu0 %vm263_vm1, %v1017_v56 }
 0x7d9   :  { %4463 = vmatpush3.msra.mxu0 %v5513_v1  ;;  %4464 = vmatprep.mubr.msk.f32.mxu0 %vm5206_vm0, %v5205_v0 }
 0x7da   :  { %4472 = vmatprep.subr.mxu0 %v5205_v0 }
 0x7dc   :  { %4465 = vmatmul.mubr.msk.f32.vlgmr.msra.gmra.mrb[18].mxu0 %vm263_vm1, %v1169_v57 }
 0x7dd   :  { %4473 = vmatpush3.msra.mxu0 %v5525_v4  ;;  %4474 = vmatprep.mubr.msk.f32.mxu0 %vm5206_vm0, %v5205_v0 }
 0x7de   :  { %4482 = vmatprep.subr.mxu0 %v5205_v0 }
 0x7e0   :  { %4475 = vmatmul.mubr.msk.f32.vlgmr.msra.gmra.mrb[20].mxu0 %vm263_vm1, %v1169_v57 }
 0x7e1   :  { %4484 = vmatprep.mubr.msk.f32.mxu0 %vm5206_vm0, %v5205_v0 }
 0x8ab   :  { %v1087_v58 = vpop.f32.mrb[16].mxu0 }
 0x8ac   :  { %v4456_v59 = vpop.f32.mrb[17].mxu0  ;;  %4460 = vmatmul.mubr.msk.f32.vlgmr.msra.gmra.mrb[4].mxu1 %vm263_vm1, %v1087_v58 }
 0x8ad   :  { %4468 = vmatpush3.msra.mxu1 %v5515_v3  ;;  %4469 = vmatprep.mubr.msk.f32.mxu1 %vm5206_vm0, %v5205_v0 }
 0x8ae   :  { %4477 = vmatprep.subr.mxu1 %v5205_v0 }
 0x8af   :  { %v1239_v60 = vpop.f32.mrb[18].mxu0 }
 0x8b0   :  { %4470 = vmatmul.mubr.msk.f32.vlgmr.msra.gmra.mrb[6].mxu1 %vm263_vm1, %v1169_v57  ;;  %v4466_v61 = vpop.f32.mrb[19].mxu0  ;;  %v1243_v6 = vmul.f32 0.17677669, %v1239_v60 }
 0x8b1   :  { %4479 = vmatprep.mubr.msk.f32.mxu1 %vm5206_vm0, %v5205_v0 }
 0x8b3   :  { %v1380_v20 = vpop.f32.mrb[20].mxu0 }
 0x8b4   :  { %v4476_v21 = vpop.f32.mrb[21].mxu0  ;;  %4483 = vmatpush3.msra.mxu0 %v1380_v20 }
 0x8b5   :  { %4492 = vmatprep.subr.mxu0 %v5205_v0 }
 0x97f   :  { %v1162_v63 = vpop.f32.mrb[4].mxu1 }
 0x980   :  { %v1166_v2 = vadd.f32 %v1162_v63, %v1092_v62  ;;  %v4461_v5 = vpop.f32.mrb[5].mxu1 }
 0x982   :  { %1167 = vst.msk [vmem:[#allocation2] sm:$0xff] %vm251_vm2, %v1166_v2 }
 0x983   :  { %v1310_v7 = vpop.f32.mrb[6].mxu1 }
 0x984   :  { %v4471_v8 = vpop.f32.mrb[7].mxu1  ;;  %4478 = vmatpush3.xpose.msk.msra.mxu1 %vm263_vm1, %v1310_v7 }
 0x985   :  { %4487 = vmatprep.subr.mxu1 %v5205_v0 }
 0x987   :  { %4480 = vmatmul.mubr.msk.f32.vlgmr.msra.gmra.mrb[8].mxu1 %vm263_vm1, %v1243_v6  ;;  %v2076_v6 = vunpack.c.1.s8 %v5542_v12 }
 0x988   :  { %4489 = vmatprep.mubr.msk.f32.mxu1 %vm5206_vm0, %v5205_v0  ;;  %4488 = vmatpush3.msra.mxu1 %v5622_v22 }
 0x989   :  { %4497 = vmatprep.subr.mxu1 %v5205_v0  ;;  %v1545_v32 = vld [vmem:[#allocation2] sm:$0xff]  ;;  %v2077_v7 = vcvt.s32.f32 %v2076_v6 }
 0x98b   :  { %v2078_v8 = vsub.f32 1.0, %v2077_v7 }
 0xa5a   :  { %v1456_v9 = vpop.f32.mrb[8].mxu1 }
 0xa5b   :  { %v1457_v10 = vadd.f32 %v1456_v9, %v5545_v16  ;;  %v4481_v11 = vpop.f32.mrb[9].mxu1  ;;  %v5691_v9 = vmul.f32 -1.767767e+19, %v2078_v8 }
 0xa5d   :  { %v1460_v13 = vsel %vm263_vm1, %v1457_v10, -inf }
 0xa5e   :  { %1461 = vmax.xlane.f32.xlu0 %v1460_v13 }
 0xaeb   :  { %v1462_v14 = vpop.xlane.xlu0 %1461 }
 0xaec   :  { %v1463_v15 = vsub.f32 %v1457_v10, %v1462_v14 }
 0xaee   :  { %v1464_v17 = vmul.f32 1.442695, %v1463_v15 }
 0xaf0   :  { %4759 = vpow2.f32 %v1464_v17 }
 0xafa   :  { %v4760_v18 = vpop.eup %4759 }
 0xafb   :  { %v1466_v19 = vsel %vm263_vm1, %v4760_v18, 0.0 }
 0xafc   :  { %1467 = vadd.xlane.f32.xlu1 %v1466_v19 }
 0xb89   :  { %v1468_v23 = vpop.xlane.xlu1 %1467 }
 0xb8a   :  { %4761 = vrcp.f32 %v1468_v23 }
 0xb94   :  { %v4762_v24 = vpop.eup %4761 }
 0xb95   :  { %v1470_v25 = vmul.f32 %v4762_v24, %v4760_v18 }
 0xb97   :  { %4485 = vmatmul.mubr.msk.f32.vlgmr.msra.gmra.mrb[22].mxu0 %vm263_vm1, %v1470_v25  ;;  %v2534_v25 = vld [vmem:[#allocation6 + $0x28] sm:$0xff] }
 0xb98   :  { %4493 = vmatpush3.msra.mxu0 %v5513_v1  ;;  %4494 = vmatprep.mubr.msk.f32.mxu0 %vm5206_vm0, %v5205_v0 }
 0xb99   :  { %4502 = vmatprep.subr.mxu0 %v5205_v0 }
 0xb9b   :  { %4495 = vmatmul.mubr.msk.f32.vlgmr.msra.gmra.mrb[24].mxu0 %vm263_vm1, %v1622_v26 }
 0xb9c   :  { %4503 = vmatpush3.msra.mxu0 %v5525_v4  ;;  %4504 = vmatprep.mubr.msk.f32.mxu0 %vm5206_vm0, %v5205_v0 }
 0xb9d   :  { %4512 = vmatprep.subr.mxu0 %v5205_v0 }
 0xb9f   :  { %4505 = vmatmul.mubr.msk.f32.vlgmr.msra.gmra.mrb[26].mxu0 %vm263_vm1, %v1622_v26 }
 0xba0   :  { %4514 = vmatprep.mubr.msk.f32.mxu0 %vm5206_vm0, %v5205_v0 }
 0xc6a   :  { %v1540_v27 = vpop.f32.mrb[22].mxu0 }
 0xc6b   :  { %v4486_v28 = vpop.f32.mrb[23].mxu0  ;;  %4490 = vmatmul.mubr.msk.f32.vlgmr.msra.gmra.mrb[10].mxu1 %vm263_vm1, %v1540_v27 }
 0xc6c   :  { %4498 = vmatpush3.msra.mxu1 %v5515_v3  ;;  %4499 = vmatprep.mubr.msk.f32.mxu1 %vm5206_vm0, %v5205_v0 }
 0xc6d   :  { %4507 = vmatprep.subr.mxu1 %v5205_v0 }
 0xc6e   :  { %v1692_v30 = vpop.f32.mrb[24].mxu0 }
 0xc6f   :  { %4500 = vmatmul.mubr.msk.f32.vlgmr.msra.gmra.mrb[12].mxu1 %vm263_vm1, %v1622_v26  ;;  %v4496_v31 = vpop.f32.mrb[25].mxu0  ;;  %v1696_v36 = vmul.f32 0.17677669, %v1692_v30 }
 0xc70   :  { %4509 = vmatprep.mubr.msk.f32.mxu1 %vm5206_vm0, %v5205_v0  ;;  %v2457_v31 = vld [vmem:[#allocation2 + $0x8] sm:$0xff] }
 0xc72   :  { %v1833_v48 = vpop.f32.mrb[26].mxu0 }
 0xc73   :  { %v4506_v49 = vpop.f32.mrb[27].mxu0  ;;  %4513 = vmatpush3.msra.mxu0 %v1833_v48 }
 0xc74   :  { %4522 = vmatprep.subr.mxu0 %v5205_v0 }
 0xd3e   :  { %v1615_v33 = vpop.f32.mrb[10].mxu1 }
 0xd3f   :  { %v1619_v34 = vadd.f32 %v1615_v33, %v1545_v32  ;;  %v4491_v35 = vpop.f32.mrb[11].mxu1 }
 0xd41   :  { %1620 = vst.msk [vmem:[#allocation2] sm:$0xff] %vm251_vm2, %v1619_v34 }
 0xd42   :  { %v1763_v37 = vpop.f32.mrb[12].mxu1 }
 0xd43   :  { %v4501_v38 = vpop.f32.mrb[13].mxu1  ;;  %4508 = vmatpush3.xpose.msk.msra.mxu1 %vm263_vm1, %v1763_v37 }
 0xd44   :  { %4517 = vmatprep.subr.mxu1 %v5205_v0 }
 0xd46   :  { %4510 = vmatmul.mubr.msk.f32.vlgmr.msra.gmra.mrb[14].mxu1 %vm263_vm1, %v1696_v36 }
 0xd47   :  { %4519 = vmatprep.mubr.msk.f32.mxu1 %vm5206_vm0, %v5205_v0  ;;  %4518 = vmatpush3.msra.mxu1 %v5657_v50 }
 0xd48   :  { %4527 = vmatprep.subr.mxu1 %v5205_v0  ;;  %v1998_v59 = vld [vmem:[#allocation2] sm:$0xff] }
 0xe19   :  { %v1909_v39 = vpop.f32.mrb[14].mxu1 }
 0xe1a   :  { %v1910_v40 = vadd.f32 %v1909_v39, %v5545_v16  ;;  %v4511_v41 = vpop.f32.mrb[15].mxu1 }
 0xe1c   :  { %v1913_v42 = vsel %vm263_vm1, %v1910_v40, -inf }
 0xe1d   :  { %1914 = vmax.xlane.f32.xlu0 %v1913_v42 }
 0xeaa   :  { %v1915_v43 = vpop.xlane.xlu0 %1914 }
 0xeab   :  { %v1916_v44 = vsub.f32 %v1910_v40, %v1915_v43 }
 0xead   :  { %v1917_v45 = vmul.f32 1.442695, %v1916_v44 }
 0xeaf   :  { %4763 = vpow2.f32 %v1917_v45 }
 0xeb9   :  { %v4764_v46 = vpop.eup %4763 }
 0xeba   :  { %v1919_v47 = vsel %vm263_vm1, %v4764_v46, 0.0 }
 0xebb   :  { %1920 = vadd.xlane.f32.xlu1 %v1919_v47 }
 0xf48   :  { %v1921_v16 = vpop.xlane.xlu1 %1920 }
 0xf49   :  { %4765 = vrcp.f32 %v1921_v16 }
 0xf53   :  { %v4766_v51 = vpop.eup %4765 }
 0xf54   :  { %v1923_v52 = vmul.f32 %v4766_v51, %v4764_v46  ;;  %v2987_v51 = vld [vmem:[#allocation6 + $0x30] sm:$0xff] }
 0xf56   :  { %4515 = vmatmul.mubr.msk.f32.vlgmr.msra.gmra.mrb[28].mxu0 %vm263_vm1, %v1923_v52 }
 0xf57   :  { %4523 = vmatpush3.msra.mxu0 %v5513_v1  ;;  %4524 = vmatprep.mubr.msk.f32.mxu0 %vm5206_vm0, %v5205_v0 }
 0xf58   :  { %4532 = vmatprep.subr.mxu0 %v5205_v0 }
 0xf5a   :  { %4525 = vmatmul.mubr.msk.f32.vlgmr.msra.gmra.mrb[30].mxu0 %vm263_vm1, %v2081_v54 }
 0xf5b   :  { %4533 = vmatpush3.msra.mxu0 %v5525_v4  ;;  %4534 = vmatprep.mubr.msk.f32.mxu0 %vm5206_vm0, %v5205_v0 }
 0xf5c   :  { %4542 = vmatprep.subr.mxu0 %v5205_v0 }
 0xf5e   :  { %4535 = vmatmul.mubr.msk.f32.vlgmr.msra.gmra.mrb[32].mxu0 %vm263_vm1, %v2081_v54 }
 0xf5f   :  { %4544 = vmatprep.mubr.msk.f32.mxu0 %vm5206_vm0, %v5205_v0 }
0x1029   :  { %v1993_v55 = vpop.f32.mrb[28].mxu0 }
0x102a   :  { %v4516_v56 = vpop.f32.mrb[29].mxu0  ;;  %4520 = vmatmul.mubr.msk.f32.vlgmr.msra.gmra.mrb[16].mxu1 %vm263_vm1, %v1993_v55 }
0x102b   :  { %4528 = vmatpush3.msra.mxu1 %v5515_v3  ;;  %4529 = vmatprep.mubr.msk.f32.mxu1 %vm5206_vm0, %v5205_v0 }
0x102c   :  { %4537 = vmatprep.subr.mxu1 %v5205_v0 }
0x102d   :  { %v2151_v57 = vpop.f32.mrb[30].mxu0 }
0x102e   :  { %4530 = vmatmul.mubr.msk.f32.vlgmr.msra.gmra.mrb[18].mxu1 %vm263_vm1, %v2081_v54  ;;  %v4526_v58 = vpop.f32.mrb[31].mxu0  ;;  %v2155_v63 = vmul.f32 0.17677669, %v2151_v57 }
0x102f   :  { %4539 = vmatprep.mubr.msk.f32.mxu1 %vm5206_vm0, %v5205_v0 }
0x1031   :  { %v2292_v12 = vpop.f32.mrb[32].mxu0 }
0x1032   :  { %v4536_v20 = vpop.f32.mrb[33].mxu0  ;;  %4543 = vmatpush3.msra.mxu0 %v2292_v12 }
0x1033   :  { %4552 = vmatprep.subr.mxu0 %v5205_v0 }
0x10fd   :  { %v2068_v60 = vpop.f32.mrb[16].mxu1 }
0x10fe   :  { %v2072_v61 = vadd.f32 %v2068_v60, %v1998_v59  ;;  %v4521_v62 = vpop.f32.mrb[17].mxu1 }
0x1100   :  { %2073 = vst.msk [vmem:[#allocation2] sm:$0xff] %vm251_vm2, %v2072_v61 }
0x1101   :  { %v2222_v2 = vpop.f32.mrb[18].mxu1 }
0x1102   :  { %v4531_v5 = vpop.f32.mrb[19].mxu1  ;;  %4538 = vmatpush3.xpose.msk.msra.mxu1 %vm263_vm1, %v2222_v2 }
0x1103   :  { %4547 = vmatprep.subr.mxu1 %v5205_v0 }
0x1105   :  { %4540 = vmatmul.mubr.msk.f32.vlgmr.msra.gmra.mrb[20].mxu1 %vm263_vm1, %v2155_v63 }
0x1106   :  { %4548 = vmatpush3.msra.mxu1 %v5550_v29  ;;  %4549 = vmatprep.mubr.msk.f32.mxu1 %vm5206_vm0, %v5205_v0 }
0x1107   :  { %4557 = vmatprep.subr.mxu1 %v5205_v0 }
0x11d8   :  { %v2368_v10 = vpop.f32.mrb[20].mxu1 }
0x11d9   :  { %v2369_v11 = vadd.f32 %v2368_v10, %v5691_v9  ;;  %v4541_v13 = vpop.f32.mrb[21].mxu1 }
0x11db   :  { %v2372_v14 = vsel %vm263_vm1, %v2369_v11, -inf }
0x11dc   :  { %2373 = vmax.xlane.f32.xlu0 %v2372_v14 }
0x1269   :  { %v2374_v15 = vpop.xlane.xlu0 %2373 }
0x126a   :  { %v2375_v29 = vsub.f32 %v2369_v11, %v2374_v15 }
0x126c   :  { %v2376_v17 = vmul.f32 1.442695, %v2375_v29 }
0x126e   :  { %4767 = vpow2.f32 %v2376_v17 }
0x1278   :  { %v4768_v18 = vpop.eup %4767 }
0x1279   :  { %v2378_v19 = vsel %vm263_vm1, %v4768_v18, 0.0 }
0x127a   :  { %2379 = vadd.xlane.f32.xlu1 %v2378_v19  ;;  %v3440_v19 = vld [vmem:[#allocation6 + $0x38] sm:$0xff] }
0x1307   :  { %v2380_v21 = vpop.xlane.xlu1 %2379 }
0x1308   :  { %4769 = vrcp.f32 %v2380_v21 }
0x1312   :  { %v4770_v23 = vpop.eup %4769 }
0x1313   :  { %v2382_v24 = vmul.f32 %v4770_v23, %v4768_v18 }
0x1315   :  { %4545 = vmatmul.mubr.msk.f32.vlgmr.msra.gmra.mrb[34].mxu0 %vm263_vm1, %v2382_v24 }
0x1316   :  { %4553 = vmatpush3.msra.mxu0 %v5513_v1  ;;  %4554 = vmatprep.mubr.msk.f32.mxu0 %vm5206_vm0, %v5205_v0 }
0x1317   :  { %4562 = vmatprep.subr.mxu0 %v5205_v0 }
0x1319   :  { %4555 = vmatmul.mubr.msk.f32.vlgmr.msra.gmra.mrb[36].mxu0 %vm263_vm1, %v2534_v25 }
0x131a   :  { %4563 = vmatpush3.msra.mxu0 %v5525_v4  ;;  %4564 = vmatprep.mubr.msk.f32.mxu0 %vm5206_vm0, %v5205_v0 }
0x131b   :  { %4572 = vmatprep.subr.mxu0 %v5205_v0 }
0x131d   :  { %4565 = vmatmul.mubr.msk.f32.vlgmr.msra.gmra.mrb[38].mxu0 %vm263_vm1, %v2534_v25 }
0x131e   :  { %4574 = vmatprep.mubr.msk.f32.mxu0 %vm5206_vm0, %v5205_v0 }
0x13e8   :  { %v2452_v26 = vpop.f32.mrb[34].mxu0 }
0x13e9   :  { %v4546_v27 = vpop.f32.mrb[35].mxu0  ;;  %4550 = vmatmul.mubr.msk.f32.vlgmr.msra.gmra.mrb[22].mxu1 %vm263_vm1, %v2452_v26 }
0x13ea   :  { %4558 = vmatpush3.msra.mxu1 %v5515_v3  ;;  %4559 = vmatprep.mubr.msk.f32.mxu1 %vm5206_vm0, %v5205_v0 }
0x13eb   :  { %4567 = vmatprep.subr.mxu1 %v5205_v0 }
0x13ec   :  { %v2604_v28 = vpop.f32.mrb[36].mxu0 }
0x13ed   :  { %4560 = vmatmul.mubr.msk.f32.vlgmr.msra.gmra.mrb[24].mxu1 %vm263_vm1, %v2534_v25  ;;  %v4556_v30 = vpop.f32.mrb[37].mxu0  ;;  %v2608_v35 = vmul.f32 0.17677669, %v2604_v28  ;;  %v3894_v28 = vld [vmem:[#allocation2] sm:$0xff] }
0x13ee   :  { %4569 = vmatprep.mubr.msk.f32.mxu1 %vm5206_vm0, %v5205_v0  ;;  %v4273_v30 = vld [vmem:[#allocation15] ss:$0 sm:$0xff] }
0x14bc   :  { %v2527_v32 = vpop.f32.mrb[22].mxu1 }
0x14bd   :  { %v2531_v33 = vadd.f32 %v2527_v32, %v2457_v31  ;;  %v4551_v34 = vpop.f32.mrb[23].mxu1  ;;  %v3903_v31 = vadd.f32 %v4273_v30, %v3894_v28 }
0x14bf   :  { %2532 = vst.msk [vmem:[#allocation2 + $0x8] sm:$0xff] %vm251_vm2, %v2531_v33  ;;  %v3892_v33 = vld [vmem:[#allocation3] sm:$0xff] }
0x14c0   :  { %v2675_v36 = vpop.f32.mrb[24].mxu1 }
0x14c1   :  { %v4561_v37 = vpop.f32.mrb[25].mxu1  ;;  %4568 = vmatpush3.xpose.msk.msra.mxu1 %vm263_vm1, %v2675_v36 }
0x14c2   :  { %4577 = vmatprep.subr.mxu1 %v5205_v0  ;;  %v3905_v37 = vadd.f32 %v3903_v31, %v3892_v33  ;;  %v4053_v31 = vld [vmem:[#allocation23 + $0x38] sm:$0xff]  ;;  %v4054_v33 = vld [vmem:[#allocation23 + $0x40] sm:$0xff] }
0x14c4   :  { %4570 = vmatmul.mubr.msk.f32.vlgmr.msra.gmra.mrb[26].mxu1 %vm263_vm1, %v2608_v35 }
0x14c5   :  { %4578 = vmatpush3.msra.mxu1 %v5587_v53  ;;  %4579 = vmatprep.mubr.msk.f32.mxu1 %vm5206_vm0, %v5205_v0  ;;  %v2745_v53 = vpop.f32.mrb[38].mxu0 }
0x14c6   :  { %4587 = vmatprep.subr.mxu1 %v5205_v0  ;;  %v4566_v47 = vpop.f32.mrb[39].mxu0  ;;  %4573 = vmatpush3.msra.mxu0 %v2745_v53  ;;  %v2910_v57 = vld [vmem:[#allocation2 + $0x8] sm:$0xff] }
0x14c7   :  { %4582 = vmatprep.subr.mxu0 %v5205_v0 }
0x1597   :  { %v2821_v38 = vpop.f32.mrb[26].mxu1 }
0x1598   :  { %v2822_v39 = vadd.f32 %v2821_v38, %v5691_v9  ;;  %v4571_v40 = vpop.f32.mrb[27].mxu1  ;;  %v3909_v38 = vsel %vm251_vm2, %v3905_v37, 0.0 }
0x159a   :  { %v2825_v41 = vsel %vm263_vm1, %v2822_v39, -inf }
0x159b   :  { %2826 = vmax.xlane.f32.xlu0 %v2825_v41 }
0x1628   :  { %v2827_v42 = vpop.xlane.xlu0 %2826 }
0x1629   :  { %v2828_v43 = vsub.f32 %v2822_v39, %v2827_v42 }
0x162b   :  { %v2829_v44 = vmul.f32 1.442695, %v2828_v43 }
0x162d   :  { %4771 = vpow2.f32 %v2829_v44 }
0x1637   :  { %v4772_v45 = vpop.eup %4771 }
0x1638   :  { %v2831_v46 = vsel %vm263_vm1, %v4772_v45, 0.0 }
0x1639   :  { %2832 = vadd.xlane.f32.xlu1 %v2831_v46 }
0x16c6   :  { %v2833_v48 = vpop.xlane.xlu1 %2832 }
0x16c7   :  { %4773 = vrcp.f32 %v2833_v48 }
0x16d1   :  { %v4774_v49 = vpop.eup %4773 }
0x16d2   :  { %v2835_v16 = vmul.f32 %v4774_v49, %v4772_v45 }
0x16d4   :  { %4575 = vmatmul.mubr.msk.f32.vlgmr.msra.gmra.mrb[40].mxu0 %vm263_vm1, %v2835_v16 }
0x16d5   :  { %4583 = vmatpush3.msra.mxu0 %v5513_v1  ;;  %4584 = vmatprep.mubr.msk.f32.mxu0 %vm5206_vm0, %v5205_v0 }
0x16d6   :  { %4592 = vmatprep.subr.mxu0 %v5205_v0 }
0x16d8   :  { %4585 = vmatmul.mubr.msk.f32.vlgmr.msra.gmra.mrb[42].mxu0 %vm263_vm1, %v2987_v51 }
0x16d9   :  { %4593 = vmatpush3.msra.mxu0 %v5525_v4  ;;  %4594 = vmatprep.mubr.msk.f32.mxu0 %vm5206_vm0, %v5205_v0 }
0x16da   :  { %4602 = vmatprep.subr.mxu0 %v5205_v0 }
0x16dc   :  { %4595 = vmatmul.mubr.msk.f32.vlgmr.msra.gmra.mrb[44].mxu0 %vm263_vm1, %v2987_v51 }
0x16dd   :  { %4604 = vmatprep.mubr.msk.f32.mxu0 %vm5206_vm0, %v5205_v0 }
0x17a7   :  { %v2905_v52 = vpop.f32.mrb[40].mxu0 }
0x17a8   :  { %v4576_v54 = vpop.f32.mrb[41].mxu0  ;;  %4580 = vmatmul.mubr.msk.f32.vlgmr.msra.gmra.mrb[28].mxu1 %vm263_vm1, %v2905_v52  ;;  %v5796_v52 = vld [vmem:[#allocation17] ss:$0 sm:$0xff] }
0x17a9   :  { %4588 = vmatpush3.msra.mxu1 %v5515_v3  ;;  %4589 = vmatprep.mubr.msk.f32.mxu1 %vm5206_vm0, %v5205_v0 }
0x17aa   :  { %4597 = vmatprep.subr.mxu1 %v5205_v0 }
0x17ab   :  { %v3057_v55 = vpop.f32.mrb[42].mxu0 }
0x17ac   :  { %4590 = vmatmul.mubr.msk.f32.vlgmr.msra.gmra.mrb[30].mxu1 %vm263_vm1, %v2987_v51  ;;  %v4586_v56 = vpop.f32.mrb[43].mxu0  ;;  %v3061_v61 = vmul.f32 0.17677669, %v3057_v55 }
0x17ad   :  { %4599 = vmatprep.mubr.msk.f32.mxu1 %vm5206_vm0, %v5205_v0 }
0x187b   :  { %v2980_v58 = vpop.f32.mrb[28].mxu1 }
0x187c   :  { %v2984_v59 = vadd.f32 %v2980_v58, %v2910_v57  ;;  %v4581_v60 = vpop.f32.mrb[29].mxu1  ;;  %v5798_v57 = vld [vmem:[#allocation18] ss:$0 sm:$0xff] }
0x187e   :  { %2985 = vst.msk [vmem:[#allocation2 + $0x8] sm:$0xff] %vm251_vm2, %v2984_v59 }
0x187f   :  { %v3128_v62 = vpop.f32.mrb[30].mxu1 }
0x1880   :  { %v4591_v63 = vpop.f32.mrb[31].mxu1  ;;  %4598 = vmatpush3.xpose.msk.msra.mxu1 %vm263_vm1, %v3128_v62 }
0x1881   :  { %4607 = vmatprep.subr.mxu1 %v5205_v0 }
0x1883   :  { %4600 = vmatmul.mubr.msk.f32.vlgmr.msra.gmra.mrb[32].mxu1 %vm263_vm1, %v3061_v61 }
0x1884   :  { %4608 = vmatpush3.msra.mxu1 %v5622_v22  ;;  %4609 = vmatprep.mubr.msk.f32.mxu1 %vm5206_vm0, %v5205_v0  ;;  %v3198_v22 = vpop.f32.mrb[44].mxu0 }
0x1885   :  { %4617 = vmatprep.subr.mxu1 %v5205_v0  ;;  %v4596_v15 = vpop.f32.mrb[45].mxu0  ;;  %4603 = vmatpush3.msra.mxu0 %v3198_v22  ;;  %v3363_v21 = vld [vmem:[#allocation2 + $0x8] sm:$0xff] }
0x1886   :  { %4612 = vmatprep.subr.mxu0 %v5205_v0 }
0x1956   :  { %v3274_v2 = vpop.f32.mrb[32].mxu1 }
0x1957   :  { %v3275_v5 = vadd.f32 %v3274_v2, %v5691_v9  ;;  %v4601_v6 = vpop.f32.mrb[33].mxu1 }
0x1958   :  { %v3893_v6 = vld [vmem:[#allocation3 + $0x8] sm:$0xff] }
0x1959   :  { %v3278_v7 = vsel %vm263_vm1, %v3275_v5, -inf }
0x195a   :  { %3279 = vmax.xlane.f32.xlu0 %v3278_v7 }
0x19e7   :  { %v3280_v8 = vpop.xlane.xlu0 %3279 }
0x19e8   :  { %v3281_v10 = vsub.f32 %v3275_v5, %v3280_v8 }
0x19ea   :  { %v3282_v11 = vmul.f32 1.442695, %v3281_v10 }
0x19ec   :  { %4775 = vpow2.f32 %v3282_v11 }
0x19f6   :  { %v4776_v13 = vpop.eup %4775 }
0x19f7   :  { %v3284_v14 = vsel %vm263_vm1, %v4776_v13, 0.0 }
0x19f8   :  { %3285 = vadd.xlane.f32.xlu1 %v3284_v14 }
0x1a85   :  { %v3286_v29 = vpop.xlane.xlu1 %3285 }
0x1a86   :  { %4777 = vrcp.f32 %v3286_v29 }
0x1a90   :  { %v4778_v17 = vpop.eup %4777 }
0x1a91   :  { %v3288_v18 = vmul.f32 %v4778_v17, %v4776_v13  ;;  %v3952_v17 = vld [vmem:[#allocation20] sm:$0xff] }
0x1a93   :  { %4605 = vmatmul.mubr.msk.f32.vlgmr.msra.gmra.mrb[46].mxu0 %vm263_vm1, %v3288_v18  ;;  %v3953_v18 = vld [vmem:[#allocation20 + $0x8] sm:$0xff] }
0x1a94   :  { %4613 = vmatpush3.msra.mxu0 %v5513_v1  ;;  %4614 = vmatprep.mubr.msk.f32.mxu0 %vm5206_vm0, %v5205_v0 }
0x1a95   :  { %4622 = vmatprep.subr.mxu0 %v5205_v0 }
0x1a97   :  { %4615 = vmatmul.mubr.msk.f32.vlgmr.msra.gmra.mrb[48].mxu0 %vm263_vm1, %v3440_v19 }
0x1a98   :  { %4623 = vmatpush3.msra.mxu0 %v5525_v4  ;;  %4624 = vmatprep.mubr.msk.f32.mxu0 %vm5206_vm0, %v5205_v0 }
0x1a99   :  { %4632 = vmatprep.subr.mxu0 %v5205_v0 }
0x1a9b   :  { %4625 = vmatmul.mubr.msk.f32.vlgmr.msra.gmra.mrb[50].mxu0 %vm263_vm1, %v3440_v19 }
0x1a9c   :  { %4634 = vmatprep.mubr.msk.f32.mxu0 %vm5206_vm0, %v5205_v0 }
0x1b66   :  { %v3358_v1 = vpop.f32.mrb[46].mxu0 }
0x1b67   :  { %v4606_v12 = vpop.f32.mrb[47].mxu0  ;;  %4610 = vmatmul.mubr.msk.f32.vlgmr.msra.gmra.mrb[34].mxu1 %vm263_vm1, %v3358_v1  ;;  %v3954_v1 = vld [vmem:[#allocation20 + $0x10] sm:$0xff] }
0x1b68   :  { %4618 = vmatpush3.msra.mxu1 %v5515_v3  ;;  %4619 = vmatprep.mubr.msk.f32.mxu1 %vm5206_vm0, %v5205_v0  ;;  %v3955_v12 = vld [vmem:[#allocation20 + $0x18] sm:$0xff] }
0x1b69   :  { %4627 = vmatprep.subr.mxu1 %v5205_v0 }
0x1b6a   :  { %v3510_v4 = vpop.f32.mrb[48].mxu0 }
0x1b6b   :  { %4620 = vmatmul.mubr.msk.f32.vlgmr.msra.gmra.mrb[36].mxu1 %vm263_vm1, %v3440_v19  ;;  %v4616_v20 = vpop.f32.mrb[49].mxu0  ;;  %v3514_v3 = vmul.f32 0.17677669, %v3510_v4  ;;  %v4688_v19 = vpack.c.bf16 %v3953_v18, %v3952_v17  ;;  %v4692_v4 = vpack.c.bf16 %v3955_v12, %v3954_v1 }
0x1b6c   :  { %4629 = vmatprep.mubr.msk.f32.mxu1 %vm5206_vm0, %v5205_v0  ;;  %v4046_v20 = vld [vmem:[#allocation23] sm:$0xff] }
0x1b6e   :  { %v3651_v46 = vpop.f32.mrb[50].mxu0 }
0x1b6f   :  { %v4626_v53 = vpop.f32.mrb[51].mxu0  ;;  %4633 = vmatpush3.msra.mxu0 %v3651_v46  ;;  %v4060_v46 = vld [vmem:[#allocation23 + $0x70] sm:$0xff] }
0x1b70   :  { %4689 = vmatprep.subr.bf16.mxu0 %v4688_v19  ;;  %v4061_v53 = vld [vmem:[#allocation23 + $0x78] sm:$0xff] }
0x1c3a   :  { %v3433_v23 = vpop.f32.mrb[34].mxu1 }
0x1c3b   :  { %v3437_v24 = vadd.f32 %v3433_v23, %v3363_v21  ;;  %v4611_v25 = vpop.f32.mrb[35].mxu1  ;;  %v4047_v21 = vld [vmem:[#allocation23 + $0x8] sm:$0xff]  ;;  %v4048_v23 = vld [vmem:[#allocation23 + $0x10] sm:$0xff] }
0x1c3c   :  { %v4049_v25 = vld [vmem:[#allocation23 + $0x18] sm:$0xff] }
0x1c3d   :  { %3438 = vst.msk [vmem:[#allocation2 + $0x8] sm:$0xff] %vm251_vm2, %v3437_v24  ;;  %v4696_v24 = vpack.c.bf16 %v4047_v21, %v4046_v20  ;;  %v4280_v20 = vld [vmem:[#allocation26] ss:$0 sm:$0xff] }
0x1c3e   :  { %v3581_v26 = vpop.f32.mrb[36].mxu1 }
0x1c3f   :  { %v4621_v27 = vpop.f32.mrb[37].mxu1  ;;  %4628 = vmatpush3.xpose.msk.msra.mxu1 %vm263_vm1, %v3581_v26  ;;  %v4700_v26 = vpack.c.bf16 %v4049_v25, %v4048_v23  ;;  %v4281_v25 = vld [vmem:[#allocation27] ss:$0 sm:$0xff] }
0x1c40   :  { %4637 = vmatprep.subr.mxu1 %v5205_v0  ;;  %v4051_v27 = vld [vmem:[#allocation23 + $0x28] sm:$0xff] }
0x1c42   :  { %4630 = vmatmul.mubr.msk.f32.vlgmr.msra.gmra.mrb[38].mxu1 %vm263_vm1, %v3514_v3  ;;  %v4050_v3 = vld [vmem:[#allocation23 + $0x20] sm:$0xff] }
0x1c43   :  { %4638 = vmatpush3.msra.mxu1 %v5657_v50  ;;  %4639 = vmatprep.mubr.msk.f32.mxu1 %vm5206_vm0, %v5205_v0  ;;  %v4704_v28 = vpack.c.bf16 %v4051_v27, %v4050_v3 }
0x1c44   :  { %v3816_v62 = vld [vmem:[#allocation2 + $0x8] sm:$0xff]  ;;  %4697 = vmatprep.subr.bf16.mxu1 %v4696_v24 }
0x1d15   :  { %v3727_v32 = vpop.f32.mrb[38].mxu1 }
0x1d16   :  { %v3728_v34 = vadd.f32 %v3727_v32, %v5691_v9  ;;  %v4631_v35 = vpop.f32.mrb[39].mxu1 }
0x1d18   :  { %v3731_v36 = vsel %vm263_vm1, %v3728_v34, -inf }
0x1d19   :  { %3732 = vmax.xlane.f32.xlu0 %v3731_v36  ;;  %v4056_v36 = vld [vmem:[#allocation23 + $0x50] sm:$0xff] }
0x1d1d   :  { %3910 = vadd.xlane.f32.xlu0 %v3909_v38 }
0x1da6   :  { %v3733_v39 = vpop.xlane.xlu0 %3732 }
0x1da7   :  { %v3734_v50 = vsub.f32 %v3728_v34, %v3733_v39  ;;  %v4055_v34 = vld [vmem:[#allocation23 + $0x48] sm:$0xff]  ;;  %v4058_v39 = vld [vmem:[#allocation23 + $0x60] sm:$0xff] }
0x1da8   :  { %v4712_v35 = vpack.c.bf16 %v4055_v34, %v4054_v33 }
0x1da9   :  { %v3735_v40 = vmul.f32 1.442695, %v3734_v50  ;;  %v4059_v50 = vld [vmem:[#allocation23 + $0x68] sm:$0xff] }
0x1daa   :  { %v3911_v41 = vpop.xlane.xlu0 %3910 }
0x1dab   :  { %4779 = vpow2.f32 %v3735_v40  ;;  %v3916_v0 = vmul.f32 0.03125, %v3911_v41  ;;  %v4720_v40 = vpack.c.bf16 %v4059_v50, %v4058_v39 }
0x1dad   :  { %v3918_v42 = vsub.f32 %v3905_v37, %v3916_v0  ;;  %v4057_v37 = vld [vmem:[#allocation23 + $0x58] sm:$0xff] }
0x1dae   :  { %v4716_v38 = vpack.c.bf16 %v4057_v37, %v4056_v36 }
0x1daf   :  { %v3920_v43 = vmul.f32 %v3918_v42, %v3918_v42 }
0x1db1   :  { %v3922_v44 = vsel %vm251_vm2, %v3920_v43, 0.0 }
0x1db2   :  { %3923 = vadd.xlane.f32.xlu0 %v3922_v44 }
0x1db5   :  { %v4780_v9 = vpop.eup %4779 }
0x1db6   :  { %v3737_v45 = vsel %vm263_vm1, %v4780_v9, 0.0 }
0x1db7   :  { %3738 = vadd.xlane.f32.xlu1 %v3737_v45 }
0x1e3f   :  { %v3924_v47 = vpop.xlane.xlu0 %3923 }
0x1e40   :  { %v3928_v48 = vmul.f32 0.03125, %v3924_v47  ;;  %v4724_v47 = vpack.c.bf16 %v4061_v53, %v4060_v46 }
0x1e42   :  { %v3930_v49 = vadd.f32 1e-05, %v3928_v48  ;;  %v4276_v48 = vld [vmem:[#allocation21] ss:$0 sm:$0xff] }
0x1e44   :  { %4781 = vrsqrt.f32 %v3930_v49  ;;  %v3739_v16 = vpop.xlane.xlu1 %3738 }
0x1e45   :  { %4783 = vrcp.f32 %v3739_v16 }
0x1e4e   :  { %v4782_v51 = vpop.eup %4781 }
0x1e4f   :  { %v4784_v54 = vpop.eup %4783  ;;  %v3934_v55 = vmul.f32 %v4782_v51, %v3918_v42 }
0x1e50   :  { %v3741_v56 = vmul.f32 %v4784_v54, %v4780_v9 }
0x1e51   :  { %v3942_v58 = vmul.f32 %v5796_v52, %v3934_v55 }
0x1e52   :  { %4635 = vmatmul.mubr.msk.f32.vlgmr.msra.gmra.mrb[52].mxu0 %vm263_vm1, %v3741_v56 }
0x1e53   :  { %v5803_v59 = vadd.f32 %v5798_v57, %v3942_v58  ;;  %4691 = vmatpush3.bf16.msra.mxu0 %v4688_v19  ;;  %v4279_v58 = vld [vmem:[#allocation24] ss:$0 sm:$0xff] }
0x1e54   :  { %4693 = vmatprep.subr.bf16.mxu0 %v4692_v4 }
0x1e55   :  { %4650 = vmatprep.mubr.msk.f32.mxu0 %vm251_vm2, %v5803_v59 }
0x1e57   :  { %4695 = vmatpush3.bf16.msra.mxu0 %v4692_v4 }
0x1f25   :  { %v3811_v60 = vpop.f32.mrb[52].mxu0 }
0x1f26   :  { %v4636_v61 = vpop.f32.mrb[53].mxu0  ;;  %4640 = vmatmul.mubr.msk.f32.vlgmr.msra.gmra.mrb[40].mxu1 %vm263_vm1, %v3811_v60 }
0x1f27   :  { %4699 = vmatpush3.bf16.msra.mxu1 %v4696_v24 }
0x1f28   :  { %4701 = vmatprep.subr.bf16.mxu1 %v4700_v26 }
0x1f2b   :  { %4703 = vmatpush3.bf16.msra.mxu1 %v4700_v26 }
0x1f2c   :  { %4705 = vmatprep.subr.bf16.mxu1 %v4704_v28 }
0x1f2f   :  { %4707 = vmatpush3.bf16.msra.mxu1 %v4704_v28 }
0x1ff9   :  { %v3886_v63 = vpop.f32.mrb[40].mxu1 }
0x1ffa   :  { %v3890_v2 = vadd.f32 %v3886_v63, %v3816_v62  ;;  %v4641_v5 = vpop.f32.mrb[41].mxu1 }
0x1ffc   :  { %3891 = vst.msk [vmem:[#allocation2 + $0x8] sm:$0xff] %vm251_vm2, %v3890_v2 }
0x2003   :  { %v3895_v7 = vld [vmem:[#allocation2 + $0x8] sm:$0xff] }
0x2004   :  { %v3904_v8 = vadd.f32 %v4273_v30, %v3895_v7  ;;  %v4052_v30 = vld [vmem:[#allocation23 + $0x30] sm:$0xff] }
0x2005   :  { %v4708_v32 = vpack.c.bf16 %v4053_v31, %v4052_v30 }
0x2006   :  { %v3906_v10 = vadd.f32 %v3904_v8, %v3893_v6 }
0x2007   :  { %4709 = vmatprep.subr.bf16.mxu1 %v4708_v32 }
0x2008   :  { %v3912_v11 = vsel %vm251_vm2, %v3906_v10, 0.0  ;;  %4711 = vmatpush3.bf16.msra.mxu1 %v4708_v32 }
0x2009   :  { %3913 = vadd.xlane.f32.xlu1 %v3912_v11  ;;  %4713 = vmatprep.subr.bf16.mxu1 %v4712_v35 }
0x200c   :  { %4715 = vmatpush3.bf16.msra.mxu1 %v4712_v35 }
0x200d   :  { %4717 = vmatprep.subr.bf16.mxu1 %v4716_v38 }
0x2010   :  { %4719 = vmatpush3.bf16.msra.mxu1 %v4716_v38 }
0x2011   :  { %4721 = vmatprep.subr.bf16.mxu1 %v4720_v40 }
0x2014   :  { %4723 = vmatpush3.bf16.msra.mxu1 %v4720_v40 }
0x2015   :  { %4725 = vmatprep.subr.bf16.mxu1 %v4724_v47 }
0x2018   :  { %4727 = vmatpush3.bf16.msra.mxu1 %v4724_v47 }
0x2096   :  { %v3914_v13 = vpop.xlane.xlu1 %3913 }
0x2097   :  { %v3917_v14 = vmul.f32 0.03125, %v3914_v13 }
0x2099   :  { %v3919_v22 = vsub.f32 %v3906_v10, %v3917_v14 }
0x209b   :  { %v3921_v15 = vmul.f32 %v3919_v22, %v3919_v22 }
0x209d   :  { %v3925_v29 = vsel %vm251_vm2, %v3921_v15, 0.0 }
0x209e   :  { %3926 = vadd.xlane.f32.xlu1 %v3925_v29 }
0x212b   :  { %v3927_v41 = vpop.xlane.xlu1 %3926 }
0x212c   :  { %v3929_v0 = vmul.f32 0.03125, %v3927_v41 }
0x212e   :  { %v3931_v42 = vadd.f32 1e-05, %v3929_v0 }
0x2130   :  { %4785 = vrsqrt.f32 %v3931_v42 }
0x213a   :  { %v4786_v43 = vpop.eup %4785 }
0x213b   :  { %v3935_v44 = vmul.f32 %v4786_v43, %v3919_v22 }
0x213d   :  { %v3943_v9 = vmul.f32 %v5796_v52, %v3935_v44 }
0x213f   :  { %v3951_v45 = vadd.f32 %v5798_v57, %v3943_v9 }
0x2141   :  { %4651 = vmatmul.mubr.msk.f32.vlgmr.msra.gmra.mrb[54].mxu0 %vm251_vm2, %v3951_v45 }
0x2214   :  { %v4652_v49 = vpop.f32.mrb[54].mxu0 }
0x2215   :  { %v4041_v16 = vadd.f32 %v4652_v49, %v4276_v48  ;;  %v4035_v51 = vpop.f32.mrb[55].mxu0 }
0x2216   :  { %v4036_v54 = vadd.f32 %v4276_v48, %v4035_v51 }
0x2217   :  { %v4045_v56 = vmax.f32 %v4041_v16, 0.0 }
0x2218   :  { %v4044_v55 = vmax.f32 %v4036_v54, 0.0 }
0x221a   :  { %4685 = vmatprep.mubr.f32.mxu1 %v4044_v55 }
0x221b   :  { %4686 = vmatmul.mubr.f32.vlgmr.msra.gmra.mrb[42].mxu1 %v4045_v56 }
0x22ee   :  { %v4687_v52 = vpop.f32.mrb[42].mxu1 }
0x22ef   :  { %v4141_v60 = vadd.f32 %v4687_v52, %v4279_v58  ;;  %v4135_v57 = vpop.f32.mrb[43].mxu1 }
0x22f0   :  { %v4136_v61 = vadd.f32 %v4279_v58, %v4135_v57 }
0x22f1   :  { %v4145_v62 = vadd.f32 %v4141_v60, %v3951_v45 }
0x22f2   :  { %v4144_v63 = vadd.f32 %v4136_v61, %v5803_v59 }
0x22f3   :  { %v4151_v2 = vsel %vm251_vm2, %v4145_v62, 0.0 }
0x22f4   :  { %4152 = vadd.xlane.f32.xlu1 %v4151_v2  ;;  %v4148_v5 = vsel %vm251_vm2, %v4144_v63, 0.0 }
0x22f5   :  { %4149 = vadd.xlane.f32.xlu0 %v4148_v5 }
0x2381   :  { %v4153_v6 = vpop.xlane.xlu1 %4152 }
0x2382   :  { %v4155_v7 = vmul.f32 0.03125, %v4153_v6  ;;  %v4150_v8 = vpop.xlane.xlu0 %4149 }
0x2383   :  { %v4154_v10 = vmul.f32 0.03125, %v4150_v8 }
0x2384   :  { %v4157_v11 = vsub.f32 %v4145_v62, %v4155_v7 }
0x2385   :  { %v4156_v13 = vsub.f32 %v4144_v63, %v4154_v10 }
0x2386   :  { %v4159_v14 = vmul.f32 %v4157_v11, %v4157_v11 }
0x2387   :  { %v4158_v22 = vmul.f32 %v4156_v13, %v4156_v13 }
0x2388   :  { %v4163_v15 = vsel %vm251_vm2, %v4159_v14, 0.0 }
0x2389   :  { %4164 = vadd.xlane.f32.xlu1 %v4163_v15  ;;  %v4160_v29 = vsel %vm251_vm2, %v4158_v22, 0.0 }
0x238a   :  { %4161 = vadd.xlane.f32.xlu0 %v4160_v29 }
0x2416   :  { %v4165_v59 = vpop.xlane.xlu1 %4164 }
0x2417   :  { %v4167_v17 = vmul.f32 0.03125, %v4165_v59  ;;  %v4162_v18 = vpop.xlane.xlu0 %4161 }
0x2418   :  { %v4166_v19 = vmul.f32 0.03125, %v4162_v18 }
0x2419   :  { %v4169_v1 = vadd.f32 1e-05, %v4167_v17 }
0x241a   :  { %v4168_v12 = vadd.f32 1e-05, %v4166_v19 }
0x241b   :  { %4787 = vrsqrt.f32 %v4169_v1 }
0x241c   :  { %4789 = vrsqrt.f32 %v4168_v12 }
0x2425   :  { %v4788_v4 = vpop.eup %4787 }
0x2426   :  { %v4790_v21 = vpop.eup %4789  ;;  %v4173_v23 = vmul.f32 %v4788_v4, %v4157_v11 }
0x2427   :  { %v4172_v24 = vmul.f32 %v4790_v21, %v4156_v13 }
0x2428   :  { %v4181_v26 = vmul.f32 %v4280_v20, %v4173_v23 }
0x2429   :  { %v4180_v3 = vmul.f32 %v4280_v20, %v4172_v24 }
0x242a   :  { %v4189_v27 = vadd.f32 %v4281_v25, %v4181_v26 }
0x242b   :  { %v4188_v28 = vadd.f32 %v4281_v25, %v4180_v3 }
0x242c   :  { %4191 = vst.msk [vmem:[#allocation29 + $0x8] sm:$0xff] %vm251_vm2, %v4189_v27 }
0x242d   :  { %4190 = vst.msk [vmem:[#allocation29] sm:$0xff] %vm251_vm2, %v4188_v28 }
0x242e   :  { %5154 = shalt.err (!%p5151_p6)
}
0x242f   :  { %s5155_s26 = scalar_lea.hbm %s5852_s16, 256 }
0x2430   :  { %p5156_p7 = scmp.ne.s32.totalorder %s5852_s16, %s5155_s26  ;;  %p5159_p8 = scmp.lt.u32.totalorder %s5155_s26, %s5852_s16 }
0x2432   :  { %p5161_p9 = pnand %p5159_p8, %p5156_p7 }
0x2434   :  { %5164 = shalt.err (!%p5161_p9)
}
0x2435   :  { %4203 = dma.vmem_to_hbm [thread:$0]  %s4198_s10, 256, %s5852_s16, [#allocation5], %s5187_s18, %s5187_s18, %s5188_s19  }
0x2436   :  { %5183 = dma.done.wait [#allocation5], 256  }
0x2437   :  { %5184 = vsyncadd [#allocation5], 4294967040 }
0x2438   :  { %4207 = vsyncpa [#allocation4], 1 }
0x2439   :  { %4208 = vsyncpa [#allocation7], 1 }
0x243a   :  { %4209 = vsyncpa [#allocation10], 1 }
0x243b   :  { %4210 = vsyncpa [#allocation13], 1 }
0x243c   :  { %4211 = vsyncpa [#allocation16], 1 }
0x243d   :  { %4212 = vsyncpa [#allocation19], 1 }
0x243e   :  { %4213 = vsyncpa [#allocation22], 1 }
0x243f   :  { %4214 = vsyncpa [#allocation25], 1 }
0x2440   :  { %4215 = vsyncpa [#allocation28], 1 }
0x2441   :  { %4216 = vsyncpa [#allocation5], 1 }

</bundles_post_ra>
